<compile_context>
chip_gen: v6e
topology: v6e:2x2x1
jax: 0.10.0
libtpu: 0.0.40
codegen_flags: <defaults>
</compile_context>

<pallas_src>
import jax
import jax.numpy as jnp
from jax.experimental import pallas as pl
from jax.experimental.pallas import tpu as pltpu

DRQN_HIDDEN_SIZE = 256
LANE = 128              # TPU lane width; q's feature dim is padded to a multiple
TARGET_ROWS = 256       # chunk rows target for long sequences (256-wide MXU M)
MAX_ROWS_ONE_SHOT = 1024  # run the whole sequence in one grid step below this


# --------------------------------------------------------------------------- #
# Kernel
# --------------------------------------------------------------------------- #
def _drqn_seq_kernel(obs_ref, h0_ref,
                     w1_ref, b1_ref,
                     wih_ref, bih_ref,
                     whh_ref, bhh_ref,
                     w2_ref, b2_ref,
                     q_ref, hout_ref,
                     hcar_ref, gibuf_ref, hbuf_ref):
    H = DRQN_HIDDEN_SIZE
    rows = gibuf_ref.shape[0]          # TIME_CHUNK * B  (static)
    B = hcar_ref.shape[0]              # batch           (static)
    tc = rows // B                     # timesteps in this chunk

    chunk = pl.program_id(0)
    last_chunk = pl.num_programs(0) - 1

    # Initialise the carried hidden state from the h0 input on the first chunk.
    @pl.when(chunk == 0)
    def _():
        hcar_ref[...] = h0_ref[...].astype(jnp.float32)

    # ---- fc1 + ReLU for the whole chunk (time-parallel, big-M matmul) ------
    x = jnp.dot(obs_ref[...], w1_ref[...],
                preferred_element_type=jnp.float32) + b1_ref[...]
    x = jnp.maximum(x, 0.0).astype(jnp.bfloat16)   # bf16: only ever an MXU LHS

    # ---- hoisted input-side GRU projection for the whole chunk -------------
    gibuf_ref[...] = jnp.dot(x, wih_ref[...],
                             preferred_element_type=jnp.float32) + bih_ref[...]

    # ---- GRU recurrence (PyTorch GRUCell semantics, gate order r, z, n) ----
    w_hh = whh_ref[...]
    b_hh_b = jnp.broadcast_to(bhh_ref[...], (B, 3 * H))   # hoisted broadcast

    def step(t, h):
        row = t * B
        if B % 8 == 0:
            row = pl.multiple_of(row, 8)       # sublane-aligned dynamic slice
        gi_t = gibuf_ref[pl.ds(row, B), :]     # precomputed x_t @ w_ih + b_ih

        gh = jnp.dot(h.astype(jnp.bfloat16), w_hh,
                     preferred_element_type=jnp.float32) + b_hh_b

        # Fused r/z sigmoid over the first 2H lanes.
        rz = jax.nn.sigmoid(gi_t[:, :2 * H] + gh[:, :2 * H])
        r, z = rz[:, :H], rz[:, H:]
        n = jnp.tanh(gi_t[:, 2 * H:] + r * gh[:, 2 * H:])
        h_new = (1.0 - z) * n + z * h

        hbuf_ref[pl.ds(row, B), :] = h_new
        return h_new

    h_final = jax.lax.fori_loop(0, tc, step, hcar_ref[...], unroll=True)
    hcar_ref[...] = h_final

    # ---- fc2 for the whole chunk (lane-dense, 128-padded output) -----------
    q = jnp.dot(hbuf_ref[...].astype(jnp.bfloat16), w2_ref[...],
                preferred_element_type=jnp.float32) + b2_ref[...]
    q_ref[...] = q.astype(q_ref.dtype)

    @pl.when(chunk == last_chunk)
    def _():
        hout_ref[...] = h_final.astype(hout_ref.dtype)


# --------------------------------------------------------------------------- #
# Parameter handling
# --------------------------------------------------------------------------- #
def init_params(key, obs_dim, act_dim):
    """Deterministic synthetic f32 parameters (pre-transposed to [in, out])."""
    H = DRQN_HIDDEN_SIZE
    ks = jax.random.split(key, 8)
    scale = 0.05
    return dict(
        w1=scale * jax.random.normal(ks[0], (obs_dim, H), jnp.float32),
        b1=scale * jax.random.normal(ks[1], (H,), jnp.float32),
        w_ih=scale * jax.random.normal(ks[2], (H, 3 * H), jnp.float32),
        b_ih=scale * jax.random.normal(ks[3], (3 * H,), jnp.float32),
        w_hh=scale * jax.random.normal(ks[4], (H, 3 * H), jnp.float32),
        b_hh=scale * jax.random.normal(ks[5], (3 * H,), jnp.float32),
        w2=scale * jax.random.normal(ks[6], (H, act_dim), jnp.float32),
        b2=scale * jax.random.normal(ks[7], (act_dim,), jnp.float32),
    )


def pack_params(params, act_dim):
    """Kernel-ready params: bf16 weights, f32 [1, out] biases, fc2 padded to 128 lanes."""
    H = DRQN_HIDDEN_SIZE
    a_pad = ((act_dim + LANE - 1) // LANE) * LANE
    w2 = jnp.zeros((H, a_pad), jnp.float32).at[:, :act_dim].set(params["w2"])
    b2 = jnp.zeros((1, a_pad), jnp.float32).at[:, :act_dim].set(
        params["b2"].reshape(1, act_dim))
    return dict(
        w1=params["w1"].astype(jnp.bfloat16),
        b1=params["b1"].reshape(1, H).astype(jnp.float32),
        w_ih=params["w_ih"].astype(jnp.bfloat16),
        b_ih=params["b_ih"].reshape(1, 3 * H).astype(jnp.float32),
        w_hh=params["w_hh"].astype(jnp.bfloat16),
        b_hh=params["b_hh"].reshape(1, 3 * H).astype(jnp.float32),
        w2=w2.astype(jnp.bfloat16),
        b2=b2,
        act_dim=act_dim,
        a_pad=a_pad,
    )


# --------------------------------------------------------------------------- #
# Wrappers
# --------------------------------------------------------------------------- #
def _pick_time_chunk(T, B):
    """Whole sequence in one grid step when small; else largest divisor of T
    with rows ~= TARGET_ROWS."""
    if T * B <= MAX_ROWS_ONE_SHOT:
        return T
    desired = max(1, TARGET_ROWS // B)
    tc = max(1, min(desired, T))
    while T % tc != 0:
        tc -= 1
    return tc


def drqn_forward_sequence(obs_seq, h0, packed):
    """Roll the DRQN over a whole sequence in one pallas_call.

    obs_seq: (T, B, obs_dim) f32, h0: (..., 256) f32
    returns q_seq (T, B, act_dim) and the final hidden state (B, 256).
    """
    T, B, obs_dim = obs_seq.shape
    H = DRQN_HIDDEN_SIZE
    act_dim, a_pad = packed["act_dim"], packed["a_pad"]

    h0 = h0.reshape(-1, H).astype(jnp.float32)      # mirrors .reshape(-1, H)
    assert h0.shape[0] == B

    tc = _pick_time_chunk(T, B)
    n_chunks = T // tc
    rows = tc * B

    # Pre-cast obs to bf16 (MXU-native LHS): halves the streamed obs DMA.
    obs_flat = obs_seq.reshape(T * B, obs_dim).astype(jnp.bfloat16)

    flops = 2 * T * B * (obs_dim * H + 2 * (H * 3 * H) + H * a_pad)
    transcendentals = 3 * T * B * H
    bytes_accessed = (obs_flat.size * 2 + T * B * a_pad * 4 + 2 * B * H * 4
                      + 2 * (obs_dim * H + 2 * H * 3 * H + H * a_pad))

    const2d = lambda c: (0, 0)   # weights / biases / hidden stay resident in VMEM

    q_pad, h_out = pl.pallas_call(
        _drqn_seq_kernel,
        out_shape=(
            jax.ShapeDtypeStruct((T * B, a_pad), jnp.float32),
            jax.ShapeDtypeStruct((B, H), jnp.float32),
        ),
        grid=(n_chunks,),
        in_specs=[
            pl.BlockSpec((rows, obs_dim), lambda c: (c, 0)),    # obs chunk (bf16)
            pl.BlockSpec((B, H), const2d),                      # h0
            pl.BlockSpec((obs_dim, H), const2d),                # w1 (bf16)
            pl.BlockSpec((1, H), const2d),                      # b1
            pl.BlockSpec((H, 3 * H), const2d),                  # w_ih (bf16)
            pl.BlockSpec((1, 3 * H), const2d),                  # b_ih
            pl.BlockSpec((H, 3 * H), const2d),                  # w_hh (bf16)
            pl.BlockSpec((1, 3 * H), const2d),                  # b_hh
            pl.BlockSpec((H, a_pad), const2d),                  # w2 (bf16, padded)
            pl.BlockSpec((1, a_pad), const2d),                  # b2 (padded)
        ],
        out_specs=(
            pl.BlockSpec((rows, a_pad), lambda c: (c, 0)),      # q (lane-dense)
            pl.BlockSpec((B, H), const2d),                      # final hidden
        ),
        scratch_shapes=[
            pltpu.VMEM((B, H), jnp.float32),          # carried hidden state
            pltpu.VMEM((rows, 3 * H), jnp.float32),   # hoisted gi for the chunk
            pltpu.VMEM((rows, H), jnp.float32),       # GRU outputs for the chunk
        ],
        compiler_params=pltpu.CompilerParams(
            dimension_semantics=("arbitrary",),       # time recurrence is sequential
        ),
        cost_estimate=pl.CostEstimate(
            flops=int(flops),
            transcendentals=int(transcendentals),
            bytes_accessed=int(bytes_accessed)),
    )(
        obs_flat, h0,
        packed["w1"], packed["b1"],
        packed["w_ih"], packed["b_ih"],
        packed["w_hh"], packed["b_hh"],
        packed["w2"], packed["b2"],
    )

    q = q_pad[:, :act_dim].reshape(T, B, act_dim)
    return q, h_out


def drqn_forward(obs, hidden_state, packed):
    """Exactly the PyTorch DRQN.forward semantics (one GRU step).

    obs: (B, obs_dim), hidden_state: (..., 256)  ->  (q (B, act_dim), h (B, 256)).
    """
    q, h = drqn_forward_sequence(obs[None], hidden_state, packed)
    return q[0], h


# --------------------------------------------------------------------------- #
# Pure-JAX f32 references (mirror the PyTorch module)
# --------------------------------------------------------------------------- #
def drqn_reference_step(obs, h, p):
    H = DRQN_HIDDEN_SIZE
    x = jax.nn.relu(obs @ p["w1"] + p["b1"])
    h = h.reshape(-1, H)
    gi = x @ p["w_ih"] + p["b_ih"]
    gh = h @ p["w_hh"] + p["b_hh"]
    i_r, i_z, i_n = gi[:, :H], gi[:, H:2 * H], gi[:, 2 * H:]
    h_r, h_z, h_n = gh[:, :H], gh[:, H:2 * H], gh[:, 2 * H:]
    r = jax.nn.sigmoid(i_r + h_r)
    z = jax.nn.sigmoid(i_z + h_z)
    n = jnp.tanh(i_n + r * h_n)
    h_new = (1.0 - z) * n + z * h
    q = h_new @ p["w2"] + p["b2"]
    return q, h_new


def drqn_reference_sequence(obs_seq, h0, p):
    def body(h, obs_t):
        q, h_new = drqn_reference_step(obs_t, h, p)
        return h_new, q
    h_final, qs = jax.lax.scan(body, h0, obs_seq)
    return qs, h_final


# --------------------------------------------------------------------------- #
if __name__ == "__main__":
    B, OBS_DIM, ACT_DIM, T = 8, 64, 16, 32

    key = jax.random.PRNGKey(0)
    k_obs, k_h, k_par = jax.random.split(key, 3)

    obs_seq = jax.random.normal(k_obs, (T, B, OBS_DIM), jnp.float32)
    h0 = jax.random.normal(k_h, (B, DRQN_HIDDEN_SIZE), jnp.float32)
    params = init_params(k_par, OBS_DIM, ACT_DIM)
    packed = pack_params(params, ACT_DIM)

    # References (f32), computed before the kernel calls.
    q_seq_ref, h_seq_ref = drqn_reference_sequence(obs_seq, h0, params)
    q1_ref, h1_ref = drqn_reference_step(obs_seq[0], h0, params)

    # Single step: exact semantics of DRQN.forward(obs, hidden_state).
    q1, h1 = drqn_forward(obs_seq[0], h0, packed)
    # Full rollout: weights stay resident in VMEM across the whole sequence.
    q_seq, h_T = drqn_forward_sequence(obs_seq, h0, packed)
    jax.block_until_ready((q1, h1, q_seq, h_T))

    assert q1.shape == (B, ACT_DIM) and h1.shape == (B, DRQN_HIDDEN_SIZE)
    assert q_seq.shape == (T, B, ACT_DIM) and h_T.shape == (B, DRQN_HIDDEN_SIZE)

    # bf16 weights / matmul operands (f32 accumulation) -> loosened tolerances
    # vs. the f32 reference; errors accumulate slowly over the 32-step rollout.
    assert jnp.allclose(q1, q1_ref, atol=2e-2, rtol=2e-2)
    assert jnp.allclose(h1, h1_ref, atol=2e-2, rtol=2e-2)
    assert jnp.allclose(q_seq, q_seq_ref, atol=5e-2, rtol=5e-2)
    assert jnp.allclose(h_T, h_seq_ref, atol=5e-2, rtol=5e-2)

    print("KERNEL_OK")
</pallas_src>

<mosaic_0001>
module attributes {stable_mosaic.version = 11 : i64} {
  func.func @_drqn_seq_kernel(%arg0: i32, %arg1: memref<8x64xbf16, #tpu.memory_space<vmem>>, %arg2: memref<8x256xf32, #tpu.memory_space<vmem>>, %arg3: memref<64x256xbf16, #tpu.memory_space<vmem>>, %arg4: memref<1x256xf32, #tpu.memory_space<vmem>>, %arg5: memref<256x768xbf16, #tpu.memory_space<vmem>>, %arg6: memref<1x768xf32, #tpu.memory_space<vmem>>, %arg7: memref<256x768xbf16, #tpu.memory_space<vmem>>, %arg8: memref<1x768xf32, #tpu.memory_space<vmem>>, %arg9: memref<256x128xbf16, #tpu.memory_space<vmem>>, %arg10: memref<1x128xf32, #tpu.memory_space<vmem>>, %arg11: memref<8x128xf32, #tpu.memory_space<vmem>>, %arg12: memref<8x256xf32, #tpu.memory_space<vmem>>, %arg13: memref<8x256xf32, #tpu.memory_space<vmem>>, %arg14: memref<8x768xf32, #tpu.memory_space<vmem>>, %arg15: memref<8x256xf32, #tpu.memory_space<vmem>>) attributes {dimension_semantics = [#tpu.dimension_semantics<arbitrary>], iteration_bounds = array<i64: 1>, scalar_prefetch = 0 : i64, scratch_operands = 3 : i64, tpu.core_type = #tpu.core_type<tc>, window_params = [{transform_indices = @transform_0, window_bounds = array<i64: 8, 64>}, {pipeline_mode = #tpu.pipeline_mode<synchronous>, transform_indices = @transform_1, window_bounds = array<i64: 8, 256>}, {pipeline_mode = #tpu.pipeline_mode<synchronous>, transform_indices = @transform_2, window_bounds = array<i64: 64, 256>}, {pipeline_mode = #tpu.pipeline_mode<synchronous>, transform_indices = @transform_3, window_bounds = array<i64: 1, 256>}, {pipeline_mode = #tpu.pipeline_mode<synchronous>, transform_indices = @transform_4, window_bounds = array<i64: 256, 768>}, {pipeline_mode = #tpu.pipeline_mode<synchronous>, transform_indices = @transform_5, window_bounds = array<i64: 1, 768>}, {pipeline_mode = #tpu.pipeline_mode<synchronous>, transform_indices = @transform_6, window_bounds = array<i64: 256, 768>}, {pipeline_mode = #tpu.pipeline_mode<synchronous>, transform_indices = @transform_7, window_bounds = array<i64: 1, 768>}, {pipeline_mode = #tpu.pipeline_mode<synchronous>, transform_indices = @transform_8, window_bounds = array<i64: 256, 128>}, {pipeline_mode = #tpu.pipeline_mode<synchronous>, transform_indices = @transform_9, window_bounds = array<i64: 1, 128>}, {transform_indices = @transform_10, window_bounds = array<i64: 8, 128>}, {pipeline_mode = #tpu.pipeline_mode<synchronous>, transform_indices = @transform_11, window_bounds = array<i64: 8, 256>}]} {
    %c0_i32 = arith.constant 0 : i32
    %0 = arith.cmpi eq, %arg0, %c0_i32 : i32
    %1 = arith.extui %0 : i1 to i32
    %c0_i32_0 = arith.constant 0 : i32
    %2 = arith.cmpi ne, %1, %c0_i32_0 : i32
    scf.if %2 {
      %c0_39 = arith.constant 0 : index
      %c0_40 = arith.constant 0 : index
      %64 = vector.load %arg2[%c0_39, %c0_40] : memref<8x256xf32, #tpu.memory_space<vmem>>, vector<8x256xf32>
      %c0_41 = arith.constant 0 : index
      %c0_42 = arith.constant 0 : index
      %65 = vector.load %arg13[%c0_41, %c0_42] : memref<8x256xf32, #tpu.memory_space<vmem>>, vector<8x256xf32>
      tpu.vector_store %arg13[%c0_41, %c0_42], %64 {strides = array<i32>} : memref<8x256xf32, #tpu.memory_space<vmem>>, vector<8x256xf32>,
    } else {
    }
    %c0 = arith.constant 0 : index
    %c0_1 = arith.constant 0 : index
    %3 = vector.load %arg1[%c0, %c0_1] : memref<8x64xbf16, #tpu.memory_space<vmem>>, vector<8x64xbf16>
    %c0_2 = arith.constant 0 : index
    %c0_3 = arith.constant 0 : index
    %4 = vector.load %arg3[%c0_2, %c0_3] : memref<64x256xbf16, #tpu.memory_space<vmem>>, vector<64x256xbf16>
    %cst = arith.constant dense<0.000000e+00> : vector<8x256xf32>
    %5 = tpu.matmul %3, %4, %cst {dimension_numbers = #tpu.dot_dimension_numbers<[1], [0], [0], [1], [0, 0, 1, 1], [], []>} : vector<8x64xbf16>, vector<64x256xbf16>, vector<8x256xf32> -> vector<8x256xf32>
    %c0_4 = arith.constant 0 : index
    %c0_5 = arith.constant 0 : index
    %6 = vector.load %arg4[%c0_4, %c0_5] : memref<1x256xf32, #tpu.memory_space<vmem>>, vector<1x256xf32>
    %7 = vector.broadcast %6 : vector<1x256xf32> to vector<8x256xf32>
    %8 = arith.addf %5, %7 : vector<8x256xf32>
    %cst_6 = arith.constant 0.000000e+00 : f32
    %9 = vector.broadcast %cst_6 : f32 to vector<8x256xf32>
    %10 = arith.maximumf %8, %9 : vector<8x256xf32>
    %11 = arith.truncf %10 : vector<8x256xf32> to vector<8x256xbf16>
    %c0_7 = arith.constant 0 : index
    %c0_8 = arith.constant 0 : index
    %12 = vector.load %arg5[%c0_7, %c0_8] : memref<256x768xbf16, #tpu.memory_space<vmem>>, vector<256x768xbf16>
    %cst_9 = arith.constant dense<0.000000e+00> : vector<8x768xf32>
    %13 = tpu.matmul %11, %12, %cst_9 {dimension_numbers = #tpu.dot_dimension_numbers<[1], [0], [0], [1], [0, 0, 1, 1], [], []>} : vector<8x256xbf16>, vector<256x768xbf16>, vector<8x768xf32> -> vector<8x768xf32>
    %c0_10 = arith.constant 0 : index
    %c0_11 = arith.constant 0 : index
    %14 = vector.load %arg6[%c0_10, %c0_11] : memref<1x768xf32, #tpu.memory_space<vmem>>, vector<1x768xf32>
    %15 = vector.broadcast %14 : vector<1x768xf32> to vector<8x768xf32>
    %16 = arith.addf %13, %15 : vector<8x768xf32>
    %c0_12 = arith.constant 0 : index
    %c0_13 = arith.constant 0 : index
    %17 = vector.load %arg14[%c0_12, %c0_13] : memref<8x768xf32, #tpu.memory_space<vmem>>, vector<8x768xf32>
    tpu.vector_store %arg14[%c0_12, %c0_13], %16 {strides = array<i32>} : memref<8x768xf32, #tpu.memory_space<vmem>>, vector<8x768xf32>,
    %c0_14 = arith.constant 0 : index
    %c0_15 = arith.constant 0 : index
    %18 = vector.load %arg7[%c0_14, %c0_15] : memref<256x768xbf16, #tpu.memory_space<vmem>>, vector<256x768xbf16>
    %c0_16 = arith.constant 0 : index
    %c0_17 = arith.constant 0 : index
    %19 = vector.load %arg8[%c0_16, %c0_17] : memref<1x768xf32, #tpu.memory_space<vmem>>, vector<1x768xf32>
    %20 = vector.shape_cast %19 : vector<1x768xf32> to vector<1x768xf32>
    %21 = vector.broadcast %20 : vector<1x768xf32> to vector<8x768xf32>
    %c0_18 = arith.constant 0 : index
    %c0_19 = arith.constant 0 : index
    %22 = vector.load %arg13[%c0_18, %c0_19] : memref<8x256xf32, #tpu.memory_space<vmem>>, vector<8x256xf32>
    %c0_i32_20 = arith.constant 0 : i32
    %c8_i32 = arith.constant 8 : i32
    %23 = arith.muli %c0_i32_20, %c8_i32 : i32
    %24 = tpu.assume_multiple %23, 8 : i32
    %25 = arith.index_cast %24 : i32 to index
    %c0_21 = arith.constant 0 : index
    %26 = vector.load %arg14[%25, %c0_21] : memref<8x768xf32, #tpu.memory_space<vmem>>, vector<8x768xf32>
    %27 = arith.truncf %22 : vector<8x256xf32> to vector<8x256xbf16>
    %cst_22 = arith.constant dense<0.000000e+00> : vector<8x768xf32>
    %28 = tpu.matmul %27, %18, %cst_22 {dimension_numbers = #tpu.dot_dimension_numbers<[1], [0], [0], [1], [0, 0, 1, 1], [], []>} : vector<8x256xbf16>, vector<256x768xbf16>, vector<8x768xf32> -> vector<8x768xf32>
    %29 = arith.addf %28, %21 : vector<8x768xf32>
    %30 = vector.extract_strided_slice %26 {offsets = [0, 0], sizes = [8, 512], strides = [1, 1]} : vector<8x768xf32> to vector<8x512xf32>
    %31 = vector.extract_strided_slice %29 {offsets = [0, 0], sizes = [8, 512], strides = [1, 1]} : vector<8x768xf32> to vector<8x512xf32>
    %32 = arith.addf %30, %31 : vector<8x512xf32>
    %33 = arith.negf %32 : vector<8x512xf32>
    %34 = math.exp %33 : vector<8x512xf32>
    %cst_23 = arith.constant 1.000000e+00 : f32
    %35 = vector.broadcast %cst_23 : f32 to vector<8x512xf32>
    %36 = arith.addf %35, %34 : vector<8x512xf32>
    %37 = arith.divf %35, %36 : vector<8x512xf32>
    %38 = vector.extract_strided_slice %37 {offsets = [0, 0], sizes = [8, 256], strides = [1, 1]} : vector<8x512xf32> to vector<8x256xf32>
    %39 = vector.extract_strided_slice %37 {offsets = [0, 256], sizes = [8, 256], strides = [1, 1]} : vector<8x512xf32> to vector<8x256xf32>
    %40 = vector.extract_strided_slice %26 {offsets = [0, 512], sizes = [8, 256], strides = [1, 1]} : vector<8x768xf32> to vector<8x256xf32>
    %41 = vector.extract_strided_slice %29 {offsets = [0, 512], sizes = [8, 256], strides = [1, 1]} : vector<8x768xf32> to vector<8x256xf32>
    %42 = arith.mulf %38, %41 : vector<8x256xf32>
    %43 = arith.addf %40, %42 : vector<8x256xf32>
    %44 = math.tanh %43 : vector<8x256xf32>
    %cst_24 = arith.constant 1.000000e+00 : f32
    %45 = vector.broadcast %cst_24 : f32 to vector<8x256xf32>
    %46 = arith.subf %45, %39 : vector<8x256xf32>
    %47 = arith.mulf %46, %44 : vector<8x256xf32>
    %48 = arith.mulf %39, %22 : vector<8x256xf32>
    %49 = arith.addf %47, %48 : vector<8x256xf32>
    %50 = arith.index_cast %24 : i32 to index
    %c0_25 = arith.constant 0 : index
    %51 = vector.load %arg15[%50, %c0_25] : memref<8x256xf32, #tpu.memory_space<vmem>>, vector<8x256xf32>
    tpu.vector_store %arg15[%50, %c0_25], %49 {strides = array<i32>} : memref<8x256xf32, #tpu.memory_space<vmem>>, vector<8x256xf32>,
    %c1_i32 = arith.constant 1 : i32
    %c0_26 = arith.constant 0 : index
    %c0_27 = arith.constant 0 : index
    %52 = vector.load %arg13[%c0_26, %c0_27] : memref<8x256xf32, #tpu.memory_space<vmem>>, vector<8x256xf32>
    tpu.vector_store %arg13[%c0_26, %c0_27], %49 {strides = array<i32>} : memref<8x256xf32, #tpu.memory_space<vmem>>, vector<8x256xf32>,
    %c0_28 = arith.constant 0 : index
    %c0_29 = arith.constant 0 : index
    %53 = vector.load %arg15[%c0_28, %c0_29] : memref<8x256xf32, #tpu.memory_space<vmem>>, vector<8x256xf32>
    %54 = arith.truncf %53 : vector<8x256xf32> to vector<8x256xbf16>
    %c0_30 = arith.constant 0 : index
    %c0_31 = arith.constant 0 : index
    %55 = vector.load %arg9[%c0_30, %c0_31] : memref<256x128xbf16, #tpu.memory_space<vmem>>, vector<256x128xbf16>
    %cst_32 = arith.constant dense<0.000000e+00> : vector<8x128xf32>
    %56 = tpu.matmul %54, %55, %cst_32 {dimension_numbers = #tpu.dot_dimension_numbers<[1], [0], [0], [1], [0, 0, 1, 1], [], []>} : vector<8x256xbf16>, vector<256x128xbf16>, vector<8x128xf32> -> vector<8x128xf32>
    %c0_33 = arith.constant 0 : index
    %c0_34 = arith.constant 0 : index
    %57 = vector.load %arg10[%c0_33, %c0_34] : memref<1x128xf32, #tpu.memory_space<vmem>>, vector<1x128xf32>
    %58 = vector.broadcast %57 : vector<1x128xf32> to vector<8x128xf32>
    %59 = arith.addf %56, %58 : vector<8x128xf32>
    %c0_35 = arith.constant 0 : index
    %c0_36 = arith.constant 0 : index
    %60 = vector.load %arg11[%c0_35, %c0_36] : memref<8x128xf32, #tpu.memory_space<vmem>>, vector<8x128xf32>
    tpu.vector_store %arg11[%c0_35, %c0_36], %59 {strides = array<i32>} : memref<8x128xf32, #tpu.memory_space<vmem>>, vector<8x128xf32>,
    %c0_i32_37 = arith.constant 0 : i32
    %61 = arith.cmpi eq, %arg0, %c0_i32_37 : i32
    %62 = arith.extui %61 : i1 to i32
    %c0_i32_38 = arith.constant 0 : i32
    %63 = arith.cmpi ne, %62, %c0_i32_38 : i32
    scf.if %63 {
      %c0_39 = arith.constant 0 : index
      %c0_40 = arith.constant 0 : index
      %64 = vector.load %arg12[%c0_39, %c0_40] : memref<8x256xf32, #tpu.memory_space<vmem>>, vector<8x256xf32>
      tpu.vector_store %arg12[%c0_39, %c0_40], %49 {strides = array<i32>} : memref<8x256xf32, #tpu.memory_space<vmem>>, vector<8x256xf32>,
    } else {
    }
    return
  }
  func.func @transform_0(%arg0: i32) -> (i32, i32) {
    %c0_i32 = arith.constant 0 : i32
    %c0_i32_0 = arith.constant 0 : i32
    return %arg0, %c0_i32 : i32, i32
  }
  func.func @transform_1(%arg0: i32) -> (i32, i32) {
    %c0_i32 = arith.constant 0 : i32
    %c0_i32_0 = arith.constant 0 : i32
    %c0_i32_1 = arith.constant 0 : i32
    return %c0_i32, %c0_i32_0 : i32, i32
  }
  func.func @transform_2(%arg0: i32) -> (i32, i32) {
    %c0_i32 = arith.constant 0 : i32
    %c0_i32_0 = arith.constant 0 : i32
    %c0_i32_1 = arith.constant 0 : i32
    return %c0_i32, %c0_i32_0 : i32, i32
  }
  func.func @transform_3(%arg0: i32) -> (i32, i32) {
    %c0_i32 = arith.constant 0 : i32
    %c0_i32_0 = arith.constant 0 : i32
    %c0_i32_1 = arith.constant 0 : i32
    return %c0_i32, %c0_i32_0 : i32, i32
  }
  func.func @transform_4(%arg0: i32) -> (i32, i32) {
    %c0_i32 = arith.constant 0 : i32
    %c0_i32_0 = arith.constant 0 : i32
    %c0_i32_1 = arith.constant 0 : i32
    return %c0_i32, %c0_i32_0 : i32, i32
  }
  func.func @transform_5(%arg0: i32) -> (i32, i32) {
    %c0_i32 = arith.constant 0 : i32
    %c0_i32_0 = arith.constant 0 : i32
    %c0_i32_1 = arith.constant 0 : i32
    return %c0_i32, %c0_i32_0 : i32, i32
  }
  func.func @transform_6(%arg0: i32) -> (i32, i32) {
    %c0_i32 = arith.constant 0 : i32
    %c0_i32_0 = arith.constant 0 : i32
    %c0_i32_1 = arith.constant 0 : i32
    return %c0_i32, %c0_i32_0 : i32, i32
  }
  func.func @transform_7(%arg0: i32) -> (i32, i32) {
    %c0_i32 = arith.constant 0 : i32
    %c0_i32_0 = arith.constant 0 : i32
    %c0_i32_1 = arith.constant 0 : i32
    return %c0_i32, %c0_i32_0 : i32, i32
  }
  func.func @transform_8(%arg0: i32) -> (i32, i32) {
    %c0_i32 = arith.constant 0 : i32
    %c0_i32_0 = arith.constant 0 : i32
    %c0_i32_1 = arith.constant 0 : i32
    return %c0_i32, %c0_i32_0 : i32, i32
  }
  func.func @transform_9(%arg0: i32) -> (i32, i32) {
    %c0_i32 = arith.constant 0 : i32
    %c0_i32_0 = arith.constant 0 : i32
    %c0_i32_1 = arith.constant 0 : i32
    return %c0_i32, %c0_i32_0 : i32, i32
  }
  func.func @transform_10(%arg0: i32) -> (i32, i32) {
    %c0_i32 = arith.constant 0 : i32
    %c0_i32_0 = arith.constant 0 : i32
    return %arg0, %c0_i32 : i32, i32
  }
  func.func @transform_11(%arg0: i32) -> (i32, i32) {
    %c0_i32 = arith.constant 0 : i32
    %c0_i32_0 = arith.constant 0 : i32
    %c0_i32_1 = arith.constant 0 : i32
    return %c0_i32, %c0_i32_0 : i32, i32
  }
}

</mosaic_0001>

<bundles_post_ra>
// kernel: tpu_custom_call.1
= control target key start
LH: loop header
LB: loop body
LE: loop exit
PB: predicated region body
PF: predicated region fallthrough
CT: control target
= control target key end

     0   :  { %17 = vsyncpa [#allocation6], 0  ;;  %s2949_s0 = inlined_call_operand.hbm [shape: bf16[8,64], index: 0, kind: input, shape index: {}]   ;;  %s2950_s1 = inlined_call_operand.hbm [shape: f32[8,256], index: 1, kind: input, shape index: {}]   ;;  %s2951_s2 = inlined_call_operand.hbm [shape: bf16[64,256], index: 2, kind: input, shape index: {}]   ;;  %s2952_s3 = inlined_call_operand.hbm [shape: f32[1,256], index: 3, kind: input, shape index: {}]   ;;  %s2953_s4 = inlined_call_operand.hbm [shape: bf16[256,768], index: 4, kind: input, shape index: {}]   ;;  %s2954_s5 = inlined_call_operand.vmem [shape: f32[1,768], index: 5, kind: input, shape index: {}]   ;;  %s2955_s6 = inlined_call_operand.hbm [shape: bf16[256,768], index: 6, kind: input, shape index: {}]   ;;  %s2956_s7 = inlined_call_operand.vmem [shape: f32[1,768], index: 7, kind: input, shape index: {}]   ;;  %s2957_s8 = inlined_call_operand.hbm [shape: bf16[256,128], index: 8, kind: input, shape index: {}]   ;;  %s2958_s9 = inlined_call_operand.vmem [shape: f32[1,128], index: 9, kind: input, shape index: {}]   ;;  %s2959_s10 = inlined_call_operand.hbm [shape: f32[8,128], index: 10, kind: output, shape index: {0}]   ;;  %s2960_s11 = inlined_call_operand.hbm [shape: f32[8,256], index: 11, kind: output, shape index: {1}]  }
   0x1   :  { %18 = vsyncpa [#allocation9], 0 }
   0x2   :  { %19 = vsyncpa [#allocation12], 0 }
   0x3   :  { %20 = vsyncpa [#allocation15], 0 }
   0x4   :  { %21 = vsyncpa [#allocation7], 0 }
   0x5   :  { %22 = vsyncpa [#allocation19], 0  ;;  %s2782_s17 = smov [#allocation8]   ;;  %s2783_s19 = smov [#allocation11]  }
   0x6   :  { %s39_s18 = sshll.u32 %s2782_s17, 4  ;;  %s61_s20 = sshll.u32 %s2783_s19, 4  ;;  %s40_s18 = int_to_ptr.vmem [resolvable:$true] %s39_s18  ;;  %s62_s20 = int_to_ptr.vmem [resolvable:$true] %s61_s20 }
   0x7   :  { %s2598_s21 = scalar_lea.vmem %s40_s18, 256  ;;  %p2603_p1 = scmp.lt.s32.totalorder %s40_s18, %s40_s18 }
   0x8   :  { %p2599_p0 = scmp.ne.s32.totalorder %s40_s18, %s2598_s21  ;;  %p2604_p2 = scmp.lt.s32.totalorder %s2598_s21, %s2598_s21 }
   0xa   :  { %p2605_p3 = por %p2604_p2, %p2603_p1 }
   0xc   :  { %p2606_p4 = pnand %p2605_p3, %p2599_p0 }
   0xe   :  { %2609 = shalt.err (!%p2606_p4)
}
   0xf   :  { %42 = dma.hbm_to_vmem [thread:$0]  %s2950_s1, 256, %s40_s18, [#allocation9]  }
  0x10   :  { %s2618_s24 = scalar_lea.vmem %s62_s20, 32  ;;  %p2623_p6 = scmp.lt.s32.totalorder %s62_s20, %s62_s20 }
  0x11   :  { %p2619_p5 = scmp.ne.s32.totalorder %s62_s20, %s2618_s24  ;;  %p2624_p7 = scmp.lt.s32.totalorder %s2618_s24, %s2618_s24 }
  0x13   :  { %p2625_p8 = por %p2624_p7, %p2623_p6 }
  0x15   :  { %p2626_p9 = pnand %p2625_p8, %p2619_p5 }
  0x17   :  { %2629 = shalt.err (!%p2626_p9)
}
  0x18   :  { %64 = dma.hbm_to_vmem [thread:$0]  %s2952_s3, 32, %s62_s20, [#allocation12]  }
  0x19   :  { %s2784_s27 = smov [#allocation14]   ;;  %s2785_s29 = smov [#allocation5]  }
  0x1a   :  { %s84_s28 = sshll.u32 %s2784_s27, 4  ;;  %s29_s30 = sshll.u32 %s2785_s29, 4  ;;  %s85_s28 = int_to_ptr.vmem [resolvable:$true] %s84_s28  ;;  %s30_s30 = int_to_ptr.vmem [resolvable:$true] %s29_s30 }
  0x1b   :  { %s2638_s12 = scalar_lea.vmem %s85_s28, 12288  ;;  %p2643_p11 = scmp.lt.s32.totalorder %s85_s28, %s85_s28 }
  0x1c   :  { %p2639_p10 = scmp.ne.s32.totalorder %s85_s28, %s2638_s12  ;;  %p2644_p12 = scmp.lt.s32.totalorder %s2638_s12, %s2638_s12 }
  0x1e   :  { %p2645_p13 = por %p2644_p12, %p2643_p11 }
  0x20   :  { %p2646_p0 = pnand %p2645_p13, %p2639_p10 }
  0x22   :  { %2649 = shalt.err (!%p2646_p0)
}
  0x23   :  { %s2786_s1 = smov 384   ;;  %s2787_s13 = smov 24  }
  0x24   :  { %90 = dma.hbm_to_vmem [thread:$0]  %s2955_s6, 12288, %s85_s28, [#allocation15], %s2786_s1, %s2786_s1, %s2787_s13  }
  0x25   :  { %s2658_s15 = scalar_lea.vmem %s30_s30, 64  ;;  %p2663_p2 = scmp.lt.s32.totalorder %s30_s30, %s30_s30 }
  0x26   :  { %p2659_p1 = scmp.ne.s32.totalorder %s30_s30, %s2658_s15  ;;  %p2664_p3 = scmp.lt.s32.totalorder %s2658_s15, %s2658_s15 }
  0x28   :  { %p2665_p4 = por %p2664_p3, %p2663_p2 }
  0x2a   :  { %p2666_p5 = pnand %p2665_p4, %p2659_p1 }
  0x2c   :  { %2669 = shalt.err (!%p2666_p5)
}
  0x2d   :  { %32 = dma.hbm_to_vmem [thread:$0]  %s2949_s0, 64, %s30_s30, [#allocation6]  }
  0x2e   :  { %s2788_s18 = smov [#allocation10]  }
  0x2f   :  { %s48_s19 = sshll.u32 %s2788_s18, 4  ;;  %s49_s19 = int_to_ptr.vmem [resolvable:$true] %s48_s19 }
  0x30   :  { %s2678_s20 = scalar_lea.vmem %s49_s19, 1024  ;;  %p2683_p7 = scmp.lt.s32.totalorder %s49_s19, %s49_s19 }
  0x31   :  { %p2679_p6 = scmp.ne.s32.totalorder %s49_s19, %s2678_s20  ;;  %p2684_p8 = scmp.lt.s32.totalorder %s2678_s20, %s2678_s20 }
  0x33   :  { %p2685_p9 = por %p2684_p8, %p2683_p7 }
  0x35   :  { %p2686_p10 = pnand %p2685_p9, %p2679_p6 }
  0x37   :  { %2689 = shalt.err (!%p2686_p10)
}
  0x38   :  { %s2789_s6 = smov 128   ;;  %s2790_s21 = smov 8  }
  0x39   :  { %54 = dma.hbm_to_vmem [thread:$0]  %s2951_s2, 1024, %s49_s19, [#allocation9], %s2789_s6, %s2789_s6, %s2790_s21  }
  0x3a   :  { %s2791_s24 = smov [#allocation13]   ;;  %s2792_s0 = smov [#allocation16]  }
  0x3b   :  { %s70_s25 = sshll.u32 %s2791_s24, 4  ;;  %s98_s26 = sshll.u32 %s2792_s0, 4  ;;  %s71_s25 = int_to_ptr.vmem [resolvable:$true] %s70_s25  ;;  %s99_s26 = int_to_ptr.vmem [resolvable:$true] %s98_s26 }
  0x3c   :  { %s2698_s27 = scalar_lea.vmem %s71_s25, 12288  ;;  %p2703_p12 = scmp.lt.s32.totalorder %s71_s25, %s71_s25 }
  0x3d   :  { %p2699_p11 = scmp.ne.s32.totalorder %s71_s25, %s2698_s27  ;;  %p2704_p13 = scmp.lt.s32.totalorder %s2698_s27, %s2698_s27 }
  0x3f   :  { %p2705_p0 = por %p2704_p13, %p2703_p12 }
  0x41   :  { %p2706_p1 = pnand %p2705_p0, %p2699_p11 }
  0x43   :  { %2709 = shalt.err (!%p2706_p1)
}
  0x44   :  { %76 = dma.hbm_to_vmem [thread:$0]  %s2953_s4, 12288, %s71_s25, [#allocation12], %s2786_s1, %s2786_s1, %s2787_s13  }
  0x45   :  { %s2718_s2 = scalar_lea.vmem %s99_s26, 2048  ;;  %p2723_p3 = scmp.lt.s32.totalorder %s99_s26, %s99_s26 }
  0x46   :  { %p2719_p2 = scmp.ne.s32.totalorder %s99_s26, %s2718_s2  ;;  %p2724_p4 = scmp.lt.s32.totalorder %s2718_s2, %s2718_s2 }
  0x48   :  { %p2725_p5 = por %p2724_p4, %p2723_p3 }
  0x4a   :  { %p2726_p6 = pnand %p2725_p5, %p2719_p2 }
  0x4c   :  { %2729 = shalt.err (!%p2726_p6)
}
  0x4d   :  { %s2793_s30 = smov 64   ;;  %s2794_s12 = smov 4  }
  0x4e   :  { %104 = dma.hbm_to_vmem [thread:$0]  %s2957_s8, 2048, %s99_s26, [#allocation15], %s2793_s30, %s2793_s30, %s2794_s12  }
  0x4f   :  { %2770 = dma.done.wait [#allocation6], 64  }
  0x50   :  { %2771 = vsyncadd [#allocation6], 4294967232 }
  0x51   :  { %2772 = dma.done.wait [#allocation9], 1280  }
  0x52   :  { %2773 = vsyncadd [#allocation9], 4294966016 }
  0x53   :  { %2774 = dma.done.wait [#allocation12], 12320  }
  0x54   :  { %2775 = vsyncadd [#allocation12], 4294954976 }
  0x55   :  { %2776 = dma.done.wait [#allocation15], 14336  }
  0x56   :  { %2777 = vsyncadd [#allocation15], 4294952960  ;;  %v2795_v0 = vmov 0   ;;  %v2254_v1 = vld [vmem:[#allocation10 + $0x34] ss:$8 sps:$4 sm:$0xff]   ;;  %vm198_vm0 = vcmask 523264  }
  0x57   :  { %234 = vmatprep.mubr.bf16.mxu0 %v2795_v0  ;;  %v2256_v2 = vld [vmem:[#allocation10 + $0x30] ss:$8 sps:$4 sm:$0xff]   ;;  %210 = vmatprep.subr.bf16.mxu0 %v2254_v1  ;;  %v2257_v3 = vld [vmem:[#allocation10 + $0x24] ss:$8 sps:$4 sm:$0xff]   ;;  %v2259_v4 = vld [vmem:[#allocation10 + $0x20] ss:$8 sps:$4 sm:$0xff]  }
  0x58   :  { %211 = vmatpush1.bf16.msra.mxu0 %v2256_v2  ;;  %v2260_v5 = vld [vmem:[#allocation10 + $0x14] ss:$8 sps:$4 sm:$0xff]   ;;  %v2262_v7 = vld [vmem:[#allocation10 + $0x10] ss:$8 sps:$4 sm:$0xff]   ;;  %v2263_v8 = vld [vmem:[#allocation10 + $0x4] ss:$8 sps:$4 sm:$0xff]  }
  0x59   :  { %212 = vmatprep.subr.bf16.mxu0 %v2257_v3  ;;  %v2266_v6 = vld [vmem:[#allocation13 + $0x154] ss:$24 sps:$4 sm:$0xff]   ;;  %v2271_v9 = vld [vmem:[#allocation13 + $0x150] ss:$24 sps:$4 sm:$0xff]   ;;  %v2272_v10 = vld [vmem:[#allocation13 + $0x124] ss:$24 sps:$4 sm:$0xff]  }
  0x5a   :  { %855 = vmatprep.subr.bf16.mxu1 %v2266_v6  ;;  %v2265_v11 = vld [vmem:[#allocation10] ss:$8 sps:$4 sm:$0xff]   ;;  %v2278_v13 = vld [vmem:[#allocation13 + $0xf4] ss:$24 sps:$4 sm:$0xff]   ;;  %v2268_v17 = vld [vmem:[#allocation13 + $0x158] ss:$24 sps:$4 sm:$0xff]  }
  0x5b   :  { %856 = vmatpush1.bf16.msra.mxu1 %v2271_v9  ;;  %v2277_v12 = vld [vmem:[#allocation13 + $0x120] ss:$24 sps:$4 sm:$0xff]   ;;  %v2270_v14 = vld [vmem:[#allocation13 + $0x15c] ss:$24 sps:$4 sm:$0xff]   ;;  %v137_v15 = vld [vmem:[#allocation5] sm:$0xf] }
  0x5c   :  { %213 = vmatpush1.bf16.msra.mxu0 %v2259_v4  ;;  %857 = vmatprep.subr.bf16.mxu1 %v2272_v10  ;;  %v2283_v16 = vld [vmem:[#allocation13 + $0xf0] ss:$24 sps:$4 sm:$0xff]   ;;  %v2284_v18 = vld [vmem:[#allocation13 + $0xc4] ss:$24 sps:$4 sm:$0xff]   ;;  %v2289_v21 = vld [vmem:[#allocation13 + $0xc0] ss:$24 sps:$4 sm:$0xff]  }
  0x5d   :  { %214 = vmatprep.subr.bf16.mxu0 %v2260_v5  ;;  %v2276_v19 = vld [vmem:[#allocation13 + $0x12c] ss:$24 sps:$4 sm:$0xff]   ;;  %v2274_v20 = vld [vmem:[#allocation13 + $0x128] ss:$24 sps:$4 sm:$0xff]   ;;  %v2282_v23 = vld [vmem:[#allocation13 + $0xfc] ss:$24 sps:$4 sm:$0xff]  }
  0x5e   :  { %v2290_v22 = vld [vmem:[#allocation13 + $0x94] ss:$24 sps:$4 sm:$0xff]   ;;  %v2295_v24 = vld [vmem:[#allocation13 + $0x90] ss:$24 sps:$4 sm:$0xff]   ;;  %v2296_v26 = vld [vmem:[#allocation13 + $0x64] ss:$24 sps:$4 sm:$0xff]  }
  0x5f   :  { %858 = vmatpush1.bf16.msra.mxu1 %v2277_v12  ;;  %v2280_v25 = vld [vmem:[#allocation13 + $0xf8] ss:$24 sps:$4 sm:$0xff]   ;;  %v2288_v27 = vld [vmem:[#allocation13 + $0xcc] ss:$24 sps:$4 sm:$0xff]   ;;  %v2286_v28 = vld [vmem:[#allocation13 + $0xc8] ss:$24 sps:$4 sm:$0xff]   ;;  %v148_v12 = vlaneseq }
  0x60   :  { %215 = vmatpush1.bf16.msra.mxu0 %v2262_v7  ;;  %859 = vmatprep.subr.bf16.mxu1 %v2278_v13  ;;  %v2301_v29 = vld [vmem:[#allocation13 + $0x60] ss:$24 sps:$4 sm:$0xff]   ;;  %v2302_v30 = vld [vmem:[#allocation13 + $0x34] ss:$24 sps:$4 sm:$0xff]   ;;  %v2307_v32 = vld [vmem:[#allocation13 + $0x30] ss:$24 sps:$4 sm:$0xff]  }
  0x61   :  { %216 = vmatprep.subr.bf16.mxu0 %v2263_v8  ;;  %v2294_v31 = vld [vmem:[#allocation13 + $0x9c] ss:$24 sps:$4 sm:$0xff]   ;;  %v2292_v33 = vld [vmem:[#allocation13 + $0x98] ss:$24 sps:$4 sm:$0xff]   ;;  %v2300_v35 = vld [vmem:[#allocation13 + $0x6c] ss:$24 sps:$4 sm:$0xff]  }
  0x62   :  { %v2308_v34 = vld [vmem:[#allocation13 + $0x4] ss:$24 sps:$4 sm:$0xff]   ;;  %v2298_v36 = vld [vmem:[#allocation13 + $0x68] ss:$24 sps:$4 sm:$0xff]   ;;  %v2314_v38 = vld [vmem:[#allocation13 + $0x2d4] ss:$24 sps:$4 sm:$0xff]  }
  0x63   :  { %860 = vmatpush1.bf16.msra.mxu1 %v2283_v16  ;;  %v2313_v37 = vld [vmem:[#allocation13] ss:$24 sps:$4 sm:$0xff]   ;;  %v2306_v39 = vld [vmem:[#allocation13 + $0x3c] ss:$24 sps:$4 sm:$0xff]   ;;  %v2319_v40 = vld [vmem:[#allocation13 + $0x2d0] ss:$24 sps:$4 sm:$0xff]  }
  0x64   :  { %217 = vmatpush1.bf16.msra.mxu0 %v2265_v11  ;;  %861 = vmatprep.subr.bf16.mxu1 %v2284_v18  ;;  %v2304_v41 = vld [vmem:[#allocation13 + $0x38] ss:$24 sps:$4 sm:$0xff]   ;;  %v2320_v42 = vld [vmem:[#allocation13 + $0x2a4] ss:$24 sps:$4 sm:$0xff]   ;;  %v2310_v44 = vld [vmem:[#allocation13 + $0x8] ss:$24 sps:$4 sm:$0xff]  }
  0x65   :  { %896 = vmatprep.subr.bf16.mxu0 %v2270_v14  ;;  %v2312_v43 = vld [vmem:[#allocation13 + $0xc] ss:$24 sps:$4 sm:$0xff]   ;;  %v2318_v45 = vld [vmem:[#allocation13 + $0x2dc] ss:$24 sps:$4 sm:$0xff]   ;;  %v2325_v46 = vld [vmem:[#allocation13 + $0x2a0] ss:$24 sps:$4 sm:$0xff]  }
  0x66   :  { %v2326_v47 = vld [vmem:[#allocation13 + $0x274] ss:$24 sps:$4 sm:$0xff]   ;;  %v2331_v48 = vld [vmem:[#allocation13 + $0x270] ss:$24 sps:$4 sm:$0xff]   ;;  %v2332_v50 = vld [vmem:[#allocation13 + $0x244] ss:$24 sps:$4 sm:$0xff]  }
  0x67   :  { %2002 = vmatmul.mubr.msk.bf16.vlgmr.msra.gmra.mxu0 %vm198_vm0, %v137_v15  ;;  %862 = vmatpush1.bf16.msra.mxu1 %v2289_v21  ;;  %v2316_v49 = vld [vmem:[#allocation13 + $0x2d8] ss:$24 sps:$4 sm:$0xff]   ;;  %v2324_v51 = vld [vmem:[#allocation13 + $0x2ac] ss:$24 sps:$4 sm:$0xff]   ;;  %v2322_v53 = vld [vmem:[#allocation13 + $0x2a8] ss:$24 sps:$4 sm:$0xff]  }
  0x68   :  { %897 = vmatpush1.bf16.msra.mxu0 %v2268_v17  ;;  %863 = vmatprep.subr.bf16.mxu1 %v2290_v22  ;;  %v2337_v52 = vld [vmem:[#allocation13 + $0x240] ss:$24 sps:$4 sm:$0xff]   ;;  %v2338_v54 = vld [vmem:[#allocation13 + $0x214] ss:$24 sps:$4 sm:$0xff]   ;;  %v2343_v56 = vld [vmem:[#allocation13 + $0x210] ss:$24 sps:$4 sm:$0xff]  }
  0x69   :  { %898 = vmatprep.subr.bf16.mxu0 %v2276_v19  ;;  %v2330_v55 = vld [vmem:[#allocation13 + $0x27c] ss:$24 sps:$4 sm:$0xff]   ;;  %v2328_v57 = vld [vmem:[#allocation13 + $0x278] ss:$24 sps:$4 sm:$0xff]   ;;  %v2336_v59 = vld [vmem:[#allocation13 + $0x24c] ss:$24 sps:$4 sm:$0xff]  }
  0x6a   :  { %v2344_v58 = vld [vmem:[#allocation13 + $0x1e4] ss:$24 sps:$4 sm:$0xff]   ;;  %v2349_v60 = vld [vmem:[#allocation13 + $0x1e0] ss:$24 sps:$4 sm:$0xff]   ;;  %v2350_v2 = vld [vmem:[#allocation13 + $0x1b4] ss:$24 sps:$4 sm:$0xff]  }
  0x6b   :  { %864 = vmatpush1.bf16.msra.mxu1 %v2295_v24  ;;  %v2334_v61 = vld [vmem:[#allocation13 + $0x248] ss:$24 sps:$4 sm:$0xff]   ;;  %v2342_v62 = vld [vmem:[#allocation13 + $0x21c] ss:$24 sps:$4 sm:$0xff]   ;;  %v2340_v63 = vld [vmem:[#allocation13 + $0x218] ss:$24 sps:$4 sm:$0xff]  }
  0x6c   :  { %899 = vmatpush1.bf16.msra.mxu0 %v2274_v20  ;;  %865 = vmatprep.subr.bf16.mxu1 %v2296_v26  ;;  %v2348_v0 = vld [vmem:[#allocation13 + $0x1ec] ss:$24 sps:$4 sm:$0xff]   ;;  %v2346_v1 = vld [vmem:[#allocation13 + $0x1e8] ss:$24 sps:$4 sm:$0xff]   ;;  %v2354_v3 = vld [vmem:[#allocation13 + $0x1bc] ss:$24 sps:$4 sm:$0xff]  }
  0x6d   :  { %900 = vmatprep.subr.bf16.mxu0 %v2282_v23  ;;  %v2352_v4 = vld [vmem:[#allocation13 + $0x1b8] ss:$24 sps:$4 sm:$0xff]   ;;  %v2356_v6 = vld [vmem:[#allocation13 + $0x184] ss:$24 sps:$4 sm:$0xff]   ;;  %v2358_v8 = vld [vmem:[#allocation13 + $0x188] ss:$24 sps:$4 sm:$0xff]  }
  0x6e   :  { %v2355_v5 = vld [vmem:[#allocation13 + $0x1b0] ss:$24 sps:$4 sm:$0xff]   ;;  %v2360_v7 = vld [vmem:[#allocation13 + $0x18c] ss:$24 sps:$4 sm:$0xff]   ;;  %v2361_v9 = vld [vmem:[#allocation13 + $0x180] ss:$24 sps:$4 sm:$0xff]  }
  0x6f   :  { %866 = vmatpush1.bf16.msra.mxu1 %v2301_v29  ;;  %v2364_v10 = vld [vmem:[#allocation13 + $0x164] ss:$24 sps:$4 sm:$0xff]   ;;  %v2367_v11 = vld [vmem:[#allocation14 + $0x154] ss:$24 sps:$4 sm:$0xff]   ;;  %v2885_v13 = vshrl.u32 %v148_v12, 7 }
  0x70   :  { %901 = vmatpush1.bf16.msra.mxu0 %v2280_v25  ;;  %867 = vmatprep.subr.bf16.mxu1 %v2302_v30  ;;  %v146_v15 = vld [vmem:[#allocation11] sm:$0x3]  ;;  %v2362_v29 = vld [vmem:[#allocation13 + $0x160] ss:$24 sps:$4 sm:$0xff]   ;;  %v2365_v30 = vld [vmem:[#allocation14 + $0x150] ss:$24 sps:$4 sm:$0xff]  }
  0x71   :  { %902 = vmatprep.subr.bf16.mxu0 %v2288_v27  ;;  %v2888_v14 = vsub.s32 0, %v2885_v13  ;;  %v2891_v16 = vsub.s32 1, %v2885_v13  ;;  %v2895_v27 = vld [vmem:[#allocation8 + $0x8] sm:$0xff] }
  0x72   :  { %v2431_v12 = vld [vmem:[#allocation14 + $0x240] ss:$24 sps:$4 sm:$0xff]  }
  0x73   :  { %868 = vmatpush1.bf16.msra.mxu1 %v2307_v32  ;;  %v151_v17 = vrot.slane %v146_v15, %v2888_v14  ;;  %v155_v18 = vrot.slane %v146_v15, %v2891_v16  ;;  %v2370_v32 = vld [vmem:[#allocation13 + $0x134] ss:$24 sps:$4 sm:$0xff]   ;;  %v2436_v15 = vld [vmem:[#allocation13 + $0x224] ss:$24 sps:$4 sm:$0xff]  }
  0x74   :  { %903 = vmatpush1.bf16.msra.mxu0 %v2286_v28  ;;  %869 = vmatprep.subr.bf16.mxu1 %v2308_v34  ;;  %v2901_v34 = vpack.c.bf16 %v2895_v27, %v2895_v27 }
  0x75   :  { %904 = vmatprep.subr.bf16.mxu0 %v2294_v31 }
  0x77   :  { %870 = vmatpush1.bf16.msra.mxu1 %v2313_v37  ;;  %v2376_v37 = vld [vmem:[#allocation13 + $0x104] ss:$24 sps:$4 sm:$0xff]  }
  0x78   :  { %905 = vmatpush1.bf16.msra.mxu0 %v2292_v33  ;;  %871 = vmatprep.subr.bf16.mxu1 %v2314_v38  ;;  %v2373_v33 = vld [vmem:[#allocation14 + $0x124] ss:$24 sps:$4 sm:$0xff]   ;;  %v2379_v38 = vld [vmem:[#allocation14 + $0xf4] ss:$24 sps:$4 sm:$0xff]  }
  0x79   :  { %906 = vmatprep.subr.bf16.mxu0 %v2300_v35  ;;  %v2368_v35 = vld [vmem:[#allocation13 + $0x130] ss:$24 sps:$4 sm:$0xff]  }
  0x7b   :  { %872 = vmatpush2.bf16.msra.mxu1 %v2319_v40  ;;  %v2377_v40 = vld [vmem:[#allocation14 + $0xf0] ss:$24 sps:$4 sm:$0xff]  }
  0x7c   :  { %907 = vmatpush1.bf16.msra.mxu0 %v2298_v36  ;;  %873 = vmatprep.subr.bf16.mxu1 %v2320_v42  ;;  %v2371_v36 = vld [vmem:[#allocation14 + $0x120] ss:$24 sps:$4 sm:$0xff]   ;;  %v2385_v42 = vld [vmem:[#allocation14 + $0xc4] ss:$24 sps:$4 sm:$0xff]  }
  0x7d   :  { %908 = vmatprep.subr.bf16.mxu0 %v2306_v39  ;;  %v2374_v39 = vld [vmem:[#allocation13 + $0x100] ss:$24 sps:$4 sm:$0xff]  }
  0x7f   :  { %874 = vmatpush2.bf16.msra.mxu1 %v2325_v46  ;;  %v2391_v46 = vld [vmem:[#allocation14 + $0x94] ss:$24 sps:$4 sm:$0xff]  }
  0x80   :  { %909 = vmatpush1.bf16.msra.mxu0 %v2304_v41  ;;  %875 = vmatprep.subr.bf16.mxu1 %v2326_v47  ;;  %v2382_v41 = vld [vmem:[#allocation13 + $0xd4] ss:$24 sps:$4 sm:$0xff]   ;;  %v2386_v47 = vld [vmem:[#allocation13 + $0xa0] ss:$24 sps:$4 sm:$0xff]  }
  0x81   :  { %910 = vmatprep.subr.bf16.mxu0 %v2312_v43  ;;  %v2380_v43 = vld [vmem:[#allocation13 + $0xd0] ss:$24 sps:$4 sm:$0xff]  }
  0x83   :  { %876 = vmatpush2.bf16.msra.mxu1 %v2331_v48  ;;  %v2389_v48 = vld [vmem:[#allocation14 + $0x90] ss:$24 sps:$4 sm:$0xff]  }
  0x84   :  { %911 = vmatpush1.bf16.msra.mxu0 %v2310_v44  ;;  %877 = vmatprep.subr.bf16.mxu1 %v2332_v50  ;;  %v2383_v44 = vld [vmem:[#allocation14 + $0xc0] ss:$24 sps:$4 sm:$0xff]   ;;  %v2397_v50 = vld [vmem:[#allocation14 + $0x64] ss:$24 sps:$4 sm:$0xff]  }
  0x85   :  { %912 = vmatprep.subr.bf16.mxu0 %v2318_v45  ;;  %v2388_v45 = vld [vmem:[#allocation13 + $0xa4] ss:$24 sps:$4 sm:$0xff]  }
  0x87   :  { %878 = vmatpush2.bf16.msra.mxu1 %v2337_v52  ;;  %v2395_v52 = vld [vmem:[#allocation14 + $0x60] ss:$24 sps:$4 sm:$0xff]  }
  0x88   :  { %913 = vmatpush2.bf16.msra.mxu0 %v2316_v49  ;;  %879 = vmatprep.subr.bf16.mxu1 %v2338_v54  ;;  %v2394_v49 = vld [vmem:[#allocation13 + $0x74] ss:$24 sps:$4 sm:$0xff]  }
  0x89   :  { %914 = vmatprep.subr.bf16.mxu0 %v2324_v51  ;;  %v2392_v51 = vld [vmem:[#allocation13 + $0x70] ss:$24 sps:$4 sm:$0xff]   ;;  %v2403_v54 = vld [vmem:[#allocation14 + $0x34] ss:$24 sps:$4 sm:$0xff]  }
  0x8b   :  { %880 = vmatpush2.bf16.msra.mxu1 %v2343_v56  ;;  %v2401_v56 = vld [vmem:[#allocation14 + $0x30] ss:$24 sps:$4 sm:$0xff]  }
  0x8c   :  { %915 = vmatpush2.bf16.msra.mxu0 %v2322_v53  ;;  %881 = vmatprep.subr.bf16.mxu1 %v2344_v58  ;;  %v2400_v53 = vld [vmem:[#allocation13 + $0x44] ss:$24 sps:$4 sm:$0xff]  }
  0x8d   :  { %916 = vmatprep.subr.bf16.mxu0 %v2330_v55  ;;  %v2398_v55 = vld [vmem:[#allocation13 + $0x40] ss:$24 sps:$4 sm:$0xff]   ;;  %v2409_v58 = vld [vmem:[#allocation14 + $0x4] ss:$24 sps:$4 sm:$0xff]  }
  0x8f   :  { %882 = vmatpush2.bf16.msra.mxu1 %v2349_v60  ;;  %v2407_v60 = vld [vmem:[#allocation14] ss:$24 sps:$4 sm:$0xff]  }
  0x90   :  { %917 = vmatpush2.bf16.msra.mxu0 %v2328_v57  ;;  %883 = vmatprep.subr.bf16.mxu1 %v2350_v2  ;;  %v2406_v57 = vld [vmem:[#allocation13 + $0x14] ss:$24 sps:$4 sm:$0xff]   ;;  %v2421_v2 = vld [vmem:[#allocation14 + $0x2a4] ss:$24 sps:$4 sm:$0xff]  }
  0x91   :  { %918 = vmatprep.subr.bf16.mxu0 %v2336_v59  ;;  %v2404_v59 = vld [vmem:[#allocation13 + $0x10] ss:$24 sps:$4 sm:$0xff]  }
  0x93   :  { %884 = vmatpush2.bf16.msra.mxu1 %v2355_v5  ;;  %v2424_v5 = vld [vmem:[#allocation13 + $0x284] ss:$24 sps:$4 sm:$0xff]  }
  0x94   :  { %919 = vmatpush2.bf16.msra.mxu0 %v2334_v61  ;;  %885 = vmatprep.subr.bf16.mxu1 %v2356_v6  ;;  %v2412_v61 = vld [vmem:[#allocation13 + $0x2e4] ss:$24 sps:$4 sm:$0xff]   ;;  %v2427_v6 = vld [vmem:[#allocation14 + $0x274] ss:$24 sps:$4 sm:$0xff]  }
  0x95   :  { %920 = vmatprep.subr.bf16.mxu0 %v2342_v62  ;;  %v2415_v62 = vld [vmem:[#allocation14 + $0x2d4] ss:$24 sps:$4 sm:$0xff]  }
  0x97   :  { %886 = vmatpush2.bf16.msra.mxu1 %v2361_v9  ;;  %v2430_v9 = vld [vmem:[#allocation13 + $0x254] ss:$24 sps:$4 sm:$0xff]  }
  0x98   :  { %921 = vmatpush2.bf16.msra.mxu0 %v2340_v63  ;;  %937 = vmatprep.subr.bf16.mxu1 %v2364_v10  ;;  %v2410_v63 = vld [vmem:[#allocation13 + $0x2e0] ss:$24 sps:$4 sm:$0xff]   ;;  %v2433_v10 = vld [vmem:[#allocation14 + $0x244] ss:$24 sps:$4 sm:$0xff]  }
  0x99   :  { %922 = vmatprep.subr.bf16.mxu0 %v2348_v0  ;;  %v2413_v0 = vld [vmem:[#allocation14 + $0x2d0] ss:$24 sps:$4 sm:$0xff]  }
  0x9c   :  { %923 = vmatpush2.bf16.msra.mxu0 %v2346_v1  ;;  %v2418_v1 = vld [vmem:[#allocation13 + $0x2b4] ss:$24 sps:$4 sm:$0xff]  }
  0x9d   :  { %924 = vmatprep.subr.bf16.mxu0 %v2354_v3  ;;  %v2416_v3 = vld [vmem:[#allocation13 + $0x2b0] ss:$24 sps:$4 sm:$0xff]  }
  0xa0   :  { %925 = vmatpush2.bf16.msra.mxu0 %v2352_v4  ;;  %v2419_v4 = vld [vmem:[#allocation14 + $0x2a0] ss:$24 sps:$4 sm:$0xff]  }
  0xa1   :  { %926 = vmatprep.subr.bf16.mxu0 %v2360_v7  ;;  %v2422_v7 = vld [vmem:[#allocation13 + $0x280] ss:$24 sps:$4 sm:$0xff]  }
  0xa4   :  { %927 = vmatpush2.bf16.msra.mxu0 %v2358_v8  ;;  %v2425_v8 = vld [vmem:[#allocation14 + $0x270] ss:$24 sps:$4 sm:$0xff]  }
  0xa5   :  { %1605 = vmatprep.subr.bf16.mxu0 %v2367_v11  ;;  %v2428_v11 = vld [vmem:[#allocation13 + $0x250] ss:$24 sps:$4 sm:$0xff]  }
 0x127   :  { %v236_v19 = vpop.f32.mrf.mxu0 }
 0x128   :  { %v237_v20 = vadd.f32 %v236_v19, %v151_v17  ;;  %v2439_v17 = vld [vmem:[#allocation14 + $0x214] ss:$24 sps:$4 sm:$0xff]   ;;  %v2437_v19 = vld [vmem:[#allocation14 + $0x210] ss:$24 sps:$4 sm:$0xff]  }
 0x129   :  { %v238_v21 = vpop.f32.mrf.mxu0 }
 0x12a   :  { %v239_v22 = vadd.f32 %v238_v21, %v155_v18  ;;  %v243_v23 = vmax.f32 %v237_v20, 0.0  ;;  %v2434_v18 = vld [vmem:[#allocation13 + $0x220] ss:$24 sps:$4 sm:$0xff]   ;;  %v2442_v20 = vld [vmem:[#allocation13 + $0x1f4] ss:$24 sps:$4 sm:$0xff]  }
 0x12b   :  { %v240_v24 = vpop.f32.mrf.mxu0  ;;  %v2445_v21 = vld [vmem:[#allocation14 + $0x1e4] ss:$24 sps:$4 sm:$0xff]  }
 0x12c   :  { %v244_v25 = vmax.f32 %v239_v22, 0.0  ;;  %v2897_v31 = vpack.c.bf16 %v243_v23, %v243_v23  ;;  %v2440_v22 = vld [vmem:[#allocation13 + $0x1f0] ss:$24 sps:$4 sm:$0xff]   ;;  %v2443_v23 = vld [vmem:[#allocation14 + $0x1e0] ss:$24 sps:$4 sm:$0xff]  }
 0x12d   :  { %v241_v26 = vpop.f32.mrf.mxu0  ;;  %v2448_v24 = vld [vmem:[#allocation13 + $0x1c4] ss:$24 sps:$4 sm:$0xff]  }
 0x12e   :  { %v246_v28 = vpack.c.bf16 %v244_v25, %v244_v25  ;;  %v2451_v25 = vld [vmem:[#allocation14 + $0x1b4] ss:$24 sps:$4 sm:$0xff]   ;;  %v2446_v26 = vld [vmem:[#allocation13 + $0x1c0] ss:$24 sps:$4 sm:$0xff]  }
 0x130   :  { %887 = vmatprep.mubr.bf16.mxu1 %v246_v28  ;;  %928 = vmatprep.mubr.bf16.mxu0 %v246_v28 }
 0x131   :  { %888 = vmatmul.mubr.bf16.vlgmr.msra.gmra.mxu1 %v2897_v31  ;;  %929 = vmatmul.mubr.bf16.vlgmr.msra.gmra.mxu0 %v2897_v31 }
 0x132   :  { %938 = vmatpush1.bf16.msra.mxu1 %v2362_v29  ;;  %1606 = vmatpush1.bf16.msra.mxu0 %v2365_v30  ;;  %v2454_v29 = vld [vmem:[#allocation13 + $0x194] ss:$24 sps:$4 sm:$0xff]   ;;  %v2457_v30 = vld [vmem:[#allocation14 + $0x184] ss:$24 sps:$4 sm:$0xff]  }
 0x133   :  { %969 = vmatprep.mubr.bf16.mxu1 %v246_v28  ;;  %939 = vmatprep.subr.bf16.mxu1 %v2370_v32  ;;  %v2449_v28 = vld [vmem:[#allocation14 + $0x1b0] ss:$24 sps:$4 sm:$0xff]  }
 0x134   :  { %1607 = vmatprep.subr.bf16.mxu0 %v2373_v33  ;;  %1637 = vmatprep.mubr.bf16.mxu0 %v2901_v34  ;;  %v2452_v32 = vld [vmem:[#allocation13 + $0x190] ss:$24 sps:$4 sm:$0xff]   ;;  %v2455_v33 = vld [vmem:[#allocation14 + $0x180] ss:$24 sps:$4 sm:$0xff]  }
 0x136   :  { %940 = vmatpush1.bf16.msra.mxu1 %v2368_v35  ;;  %1608 = vmatpush1.bf16.msra.mxu0 %v2371_v36  ;;  %v2906_v35 = vld [vmem:[#allocation8] sm:$0xff] }
 0x137   :  { %941 = vmatprep.subr.bf16.mxu1 %v2376_v37  ;;  %1609 = vmatprep.subr.bf16.mxu0 %v2379_v38  ;;  %v2460_v36 = vld [vmem:[#allocation14 + $0x15c] ss:$24 sps:$4 sm:$0xff]   ;;  %v2910_v38 = vpack.c.bf16 %v2906_v35, %v2906_v35 }
 0x138   :  { %v2463_v37 = vld [vmem:[#allocation14 + $0x164] ss:$24 sps:$4 sm:$0xff]  }
 0x13a   :  { %942 = vmatpush1.bf16.msra.mxu1 %v2374_v39  ;;  %1610 = vmatpush1.bf16.msra.mxu0 %v2377_v40  ;;  %v2458_v39 = vld [vmem:[#allocation14 + $0x158] ss:$24 sps:$4 sm:$0xff]  }
 0x13b   :  { %943 = vmatprep.subr.bf16.mxu1 %v2382_v41  ;;  %1611 = vmatprep.subr.bf16.mxu0 %v2385_v42  ;;  %v2461_v40 = vld [vmem:[#allocation14 + $0x160] ss:$24 sps:$4 sm:$0xff]   ;;  %v2466_v41 = vld [vmem:[#allocation14 + $0x12c] ss:$24 sps:$4 sm:$0xff]  }
 0x13c   :  { %v2469_v42 = vld [vmem:[#allocation14 + $0x134] ss:$24 sps:$4 sm:$0xff]  }
 0x13e   :  { %944 = vmatpush1.bf16.msra.mxu1 %v2380_v43  ;;  %1612 = vmatpush1.bf16.msra.mxu0 %v2383_v44  ;;  %v2464_v43 = vld [vmem:[#allocation14 + $0x128] ss:$24 sps:$4 sm:$0xff]  }
 0x13f   :  { %945 = vmatprep.subr.bf16.mxu1 %v2388_v45  ;;  %1613 = vmatprep.subr.bf16.mxu0 %v2391_v46  ;;  %v2467_v44 = vld [vmem:[#allocation14 + $0x130] ss:$24 sps:$4 sm:$0xff]   ;;  %v2472_v45 = vld [vmem:[#allocation14 + $0xfc] ss:$24 sps:$4 sm:$0xff]  }
 0x140   :  { %v2475_v46 = vld [vmem:[#allocation14 + $0x104] ss:$24 sps:$4 sm:$0xff]  }
 0x142   :  { %946 = vmatpush1.bf16.msra.mxu1 %v2386_v47  ;;  %1614 = vmatpush1.bf16.msra.mxu0 %v2389_v48  ;;  %v2470_v47 = vld [vmem:[#allocation14 + $0xf8] ss:$24 sps:$4 sm:$0xff]  }
 0x143   :  { %947 = vmatprep.subr.bf16.mxu1 %v2394_v49  ;;  %1615 = vmatprep.subr.bf16.mxu0 %v2397_v50  ;;  %v2473_v48 = vld [vmem:[#allocation14 + $0x100] ss:$24 sps:$4 sm:$0xff]   ;;  %v2481_v49 = vld [vmem:[#allocation14 + $0xd4] ss:$24 sps:$4 sm:$0xff]  }
 0x144   :  { %v2476_v50 = vld [vmem:[#allocation14 + $0xc8] ss:$24 sps:$4 sm:$0xff]  }
 0x146   :  { %948 = vmatpush1.bf16.msra.mxu1 %v2392_v51  ;;  %1616 = vmatpush1.bf16.msra.mxu0 %v2395_v52  ;;  %v2479_v51 = vld [vmem:[#allocation14 + $0xd0] ss:$24 sps:$4 sm:$0xff]   ;;  %v2484_v52 = vld [vmem:[#allocation14 + $0x9c] ss:$24 sps:$4 sm:$0xff]  }
 0x147   :  { %949 = vmatprep.subr.bf16.mxu1 %v2400_v53  ;;  %1617 = vmatprep.subr.bf16.mxu0 %v2403_v54  ;;  %v2487_v53 = vld [vmem:[#allocation14 + $0xa4] ss:$24 sps:$4 sm:$0xff]   ;;  %v2482_v54 = vld [vmem:[#allocation14 + $0x98] ss:$24 sps:$4 sm:$0xff]  }
 0x14a   :  { %950 = vmatpush1.bf16.msra.mxu1 %v2398_v55  ;;  %1618 = vmatpush1.bf16.msra.mxu0 %v2401_v56  ;;  %v2490_v55 = vld [vmem:[#allocation14 + $0x6c] ss:$24 sps:$4 sm:$0xff]  }
 0x14b   :  { %951 = vmatprep.subr.bf16.mxu1 %v2406_v57  ;;  %1619 = vmatprep.subr.bf16.mxu0 %v2409_v58  ;;  %v2493_v56 = vld [vmem:[#allocation14 + $0x74] ss:$24 sps:$4 sm:$0xff]   ;;  %v2488_v57 = vld [vmem:[#allocation14 + $0x68] ss:$24 sps:$4 sm:$0xff]  }
 0x14c   :  { %v2491_v58 = vld [vmem:[#allocation14 + $0x70] ss:$24 sps:$4 sm:$0xff]  }
 0x14e   :  { %952 = vmatpush1.bf16.msra.mxu1 %v2404_v59  ;;  %1620 = vmatpush1.bf16.msra.mxu0 %v2407_v60  ;;  %v2496_v59 = vld [vmem:[#allocation14 + $0x3c] ss:$24 sps:$4 sm:$0xff]  }
 0x14f   :  { %953 = vmatprep.subr.bf16.mxu1 %v2412_v61  ;;  %1621 = vmatprep.subr.bf16.mxu0 %v2415_v62  ;;  %v2499_v60 = vld [vmem:[#allocation14 + $0x44] ss:$24 sps:$4 sm:$0xff]   ;;  %v2494_v61 = vld [vmem:[#allocation14 + $0x38] ss:$24 sps:$4 sm:$0xff]  }
 0x150   :  { %v2497_v62 = vld [vmem:[#allocation14 + $0x40] ss:$24 sps:$4 sm:$0xff]  }
 0x152   :  { %954 = vmatpush2.bf16.msra.mxu1 %v2410_v63  ;;  %1622 = vmatpush2.bf16.msra.mxu0 %v2413_v0  ;;  %v2502_v63 = vld [vmem:[#allocation14 + $0xc] ss:$24 sps:$4 sm:$0xff]  }
 0x153   :  { %955 = vmatprep.subr.bf16.mxu1 %v2418_v1  ;;  %1623 = vmatprep.subr.bf16.mxu0 %v2421_v2  ;;  %v2505_v0 = vld [vmem:[#allocation14 + $0x14] ss:$24 sps:$4 sm:$0xff]   ;;  %v2500_v1 = vld [vmem:[#allocation14 + $0x8] ss:$24 sps:$4 sm:$0xff]  }
 0x154   :  { %v2503_v2 = vld [vmem:[#allocation14 + $0x10] ss:$24 sps:$4 sm:$0xff]  }
 0x156   :  { %956 = vmatpush2.bf16.msra.mxu1 %v2416_v3  ;;  %1624 = vmatpush2.bf16.msra.mxu0 %v2419_v4  ;;  %v2508_v3 = vld [vmem:[#allocation14 + $0x2dc] ss:$24 sps:$4 sm:$0xff]  }
 0x157   :  { %957 = vmatprep.subr.bf16.mxu1 %v2424_v5  ;;  %1625 = vmatprep.subr.bf16.mxu0 %v2427_v6  ;;  %v2511_v4 = vld [vmem:[#allocation14 + $0x2e4] ss:$24 sps:$4 sm:$0xff]   ;;  %v2506_v5 = vld [vmem:[#allocation14 + $0x2d8] ss:$24 sps:$4 sm:$0xff]  }
 0x158   :  { %v2509_v6 = vld [vmem:[#allocation14 + $0x2e0] ss:$24 sps:$4 sm:$0xff]  }
 0x15a   :  { %958 = vmatpush2.bf16.msra.mxu1 %v2422_v7  ;;  %1626 = vmatpush2.bf16.msra.mxu0 %v2425_v8  ;;  %v2514_v7 = vld [vmem:[#allocation14 + $0x2ac] ss:$24 sps:$4 sm:$0xff]  }
 0x15b   :  { %959 = vmatprep.subr.bf16.mxu1 %v2430_v9  ;;  %1627 = vmatprep.subr.bf16.mxu0 %v2433_v10  ;;  %v2517_v8 = vld [vmem:[#allocation14 + $0x2b4] ss:$24 sps:$4 sm:$0xff]   ;;  %v2512_v9 = vld [vmem:[#allocation14 + $0x2a8] ss:$24 sps:$4 sm:$0xff]  }
 0x15c   :  { %v2515_v10 = vld [vmem:[#allocation14 + $0x2b0] ss:$24 sps:$4 sm:$0xff]  }
 0x15e   :  { %960 = vmatpush2.bf16.msra.mxu1 %v2428_v11  ;;  %1628 = vmatpush2.bf16.msra.mxu0 %v2431_v12  ;;  %v2520_v11 = vld [vmem:[#allocation14 + $0x27c] ss:$24 sps:$4 sm:$0xff]  }
 0x15f   :  { %961 = vmatprep.subr.bf16.mxu1 %v2436_v15  ;;  %1629 = vmatprep.subr.bf16.mxu0 %v2439_v17  ;;  %v2523_v12 = vld [vmem:[#allocation14 + $0x284] ss:$24 sps:$4 sm:$0xff]   ;;  %v2518_v15 = vld [vmem:[#allocation14 + $0x278] ss:$24 sps:$4 sm:$0xff]  }
 0x160   :  { %v2521_v17 = vld [vmem:[#allocation14 + $0x280] ss:$24 sps:$4 sm:$0xff]  }
 0x162   :  { %962 = vmatpush2.bf16.msra.mxu1 %v2434_v18  ;;  %1630 = vmatpush2.bf16.msra.mxu0 %v2437_v19  ;;  %v2526_v18 = vld [vmem:[#allocation14 + $0x24c] ss:$24 sps:$4 sm:$0xff]  }
 0x163   :  { %963 = vmatprep.subr.bf16.mxu1 %v2442_v20  ;;  %1631 = vmatprep.subr.bf16.mxu0 %v2445_v21  ;;  %v2529_v19 = vld [vmem:[#allocation14 + $0x254] ss:$24 sps:$4 sm:$0xff]   ;;  %v2524_v20 = vld [vmem:[#allocation14 + $0x248] ss:$24 sps:$4 sm:$0xff]  }
 0x164   :  { %v2527_v21 = vld [vmem:[#allocation14 + $0x250] ss:$24 sps:$4 sm:$0xff]  }
 0x166   :  { %964 = vmatpush2.bf16.msra.mxu1 %v2440_v22  ;;  %1632 = vmatpush2.bf16.msra.mxu0 %v2443_v23  ;;  %v2532_v22 = vld [vmem:[#allocation14 + $0x21c] ss:$24 sps:$4 sm:$0xff]  }
 0x167   :  { %965 = vmatprep.subr.bf16.mxu1 %v2448_v24  ;;  %1633 = vmatprep.subr.bf16.mxu0 %v2451_v25  ;;  %v2535_v23 = vld [vmem:[#allocation14 + $0x224] ss:$24 sps:$4 sm:$0xff]   ;;  %v2530_v24 = vld [vmem:[#allocation14 + $0x218] ss:$24 sps:$4 sm:$0xff]  }
 0x168   :  { %v2533_v25 = vld [vmem:[#allocation14 + $0x220] ss:$24 sps:$4 sm:$0xff]  }
 0x16a   :  { %966 = vmatpush2.bf16.msra.mxu1 %v2446_v26  ;;  %1634 = vmatpush2.bf16.msra.mxu0 %v2449_v28  ;;  %v2538_v26 = vld [vmem:[#allocation14 + $0x1ec] ss:$24 sps:$4 sm:$0xff]  }
 0x16b   :  { %967 = vmatprep.subr.bf16.mxu1 %v2454_v29  ;;  %1635 = vmatprep.subr.bf16.mxu0 %v2457_v30  ;;  %v2541_v28 = vld [vmem:[#allocation14 + $0x1f4] ss:$24 sps:$4 sm:$0xff]   ;;  %v2536_v29 = vld [vmem:[#allocation14 + $0x1e8] ss:$24 sps:$4 sm:$0xff]  }
 0x16c   :  { %v2539_v30 = vld [vmem:[#allocation14 + $0x1f0] ss:$24 sps:$4 sm:$0xff]  }
 0x16e   :  { %968 = vmatpush2.bf16.msra.mxu1 %v2452_v32  ;;  %1636 = vmatpush2.bf16.msra.mxu0 %v2455_v33  ;;  %v2544_v32 = vld [vmem:[#allocation14 + $0x1bc] ss:$24 sps:$4 sm:$0xff]  }
 0x16f   :  { %1646 = vmatprep.subr.bf16.mxu1 %v2460_v36  ;;  %1687 = vmatprep.subr.bf16.mxu0 %v2463_v37  ;;  %v2547_v33 = vld [vmem:[#allocation14 + $0x1c4] ss:$24 sps:$4 sm:$0xff]   ;;  %v2542_v36 = vld [vmem:[#allocation14 + $0x1b8] ss:$24 sps:$4 sm:$0xff]  }
 0x170   :  { %v2545_v37 = vld [vmem:[#allocation14 + $0x1c0] ss:$24 sps:$4 sm:$0xff]  }
 0x171   :  { %970 = vmatmul.mubr.bf16.vlgmr.msra.gmra.mxu1 %v2897_v31  ;;  %1638 = vmatmul.mubr.bf16.vlgmr.msra.gmra.mxu0 %v2910_v38  ;;  %v2478_v31 = vld [vmem:[#allocation14 + $0xcc] ss:$24 sps:$4 sm:$0xff]  }
 0x172   :  { %1647 = vmatpush1.bf16.msra.mxu1 %v2458_v39  ;;  %1688 = vmatpush1.bf16.msra.mxu0 %v2461_v40  ;;  %v2550_v39 = vld [vmem:[#allocation14 + $0x18c] ss:$24 sps:$4 sm:$0xff]  }
 0x173   :  { %1648 = vmatprep.subr.bf16.mxu1 %v2466_v41  ;;  %1689 = vmatprep.subr.bf16.mxu0 %v2469_v42  ;;  %v2553_v40 = vld [vmem:[#allocation14 + $0x194] ss:$24 sps:$4 sm:$0xff]   ;;  %v2548_v41 = vld [vmem:[#allocation14 + $0x188] ss:$24 sps:$4 sm:$0xff]  }
 0x174   :  { %1678 = vmatprep.mubr.bf16.mxu1 %v2901_v34  ;;  %1719 = vmatprep.mubr.bf16.mxu0 %v2901_v34  ;;  %v2485_v34 = vld [vmem:[#allocation14 + $0xa0] ss:$24 sps:$4 sm:$0xff]   ;;  %v2551_v42 = vld [vmem:[#allocation14 + $0x190] ss:$24 sps:$4 sm:$0xff]  }
 0x176   :  { %1649 = vmatpush1.bf16.msra.mxu1 %v2464_v43  ;;  %1690 = vmatpush1.bf16.msra.mxu0 %v2467_v44 }
 0x177   :  { %1650 = vmatprep.subr.bf16.mxu1 %v2472_v45  ;;  %1691 = vmatprep.subr.bf16.mxu0 %v2475_v46 }
 0x17a   :  { %1651 = vmatpush1.bf16.msra.mxu1 %v2470_v47  ;;  %1692 = vmatpush1.bf16.msra.mxu0 %v2473_v48 }
 0x17b   :  { %1652 = vmatprep.subr.bf16.mxu1 %v2478_v31  ;;  %1693 = vmatprep.subr.bf16.mxu0 %v2481_v49 }
 0x17e   :  { %1653 = vmatpush1.bf16.msra.mxu1 %v2476_v50  ;;  %1694 = vmatpush1.bf16.msra.mxu0 %v2479_v51  ;;  %v2554_v50 = vld [vmem:[#allocation16 + $0x78] sm:$0xff]  }
 0x17f   :  { %1654 = vmatprep.subr.bf16.mxu1 %v2484_v52  ;;  %1695 = vmatprep.subr.bf16.mxu0 %v2487_v53  ;;  %v2555_v51 = vld [vmem:[#allocation16 + $0x38] sm:$0xff]   ;;  %v2556_v52 = vld [vmem:[#allocation16 + $0x70] sm:$0xff]  }
 0x180   :  { %v2557_v53 = vld [vmem:[#allocation16 + $0x30] sm:$0xff]  }
 0x182   :  { %1655 = vmatpush1.bf16.msra.mxu1 %v2482_v54  ;;  %1696 = vmatpush1.bf16.msra.mxu0 %v2485_v34  ;;  %v2558_v54 = vld [vmem:[#allocation16 + $0x68] sm:$0xff]   ;;  %v2560_v34 = vld [vmem:[#allocation16 + $0x60] sm:$0xff]  }
 0x183   :  { %1656 = vmatprep.subr.bf16.mxu1 %v2490_v55  ;;  %1697 = vmatprep.subr.bf16.mxu0 %v2493_v56  ;;  %v2561_v55 = vld [vmem:[#allocation16 + $0x20] sm:$0xff]   ;;  %v2562_v56 = vld [vmem:[#allocation16 + $0x58] sm:$0xff]  }
 0x186   :  { %1657 = vmatpush1.bf16.msra.mxu1 %v2488_v57  ;;  %1698 = vmatpush1.bf16.msra.mxu0 %v2491_v58  ;;  %v2563_v57 = vld [vmem:[#allocation16 + $0x18] sm:$0xff]   ;;  %v2564_v58 = vld [vmem:[#allocation16 + $0x50] sm:$0xff]  }
 0x187   :  { %1658 = vmatprep.subr.bf16.mxu1 %v2496_v59  ;;  %1699 = vmatprep.subr.bf16.mxu0 %v2499_v60  ;;  %v2565_v59 = vld [vmem:[#allocation16 + $0x10] sm:$0xff]   ;;  %v2566_v60 = vld [vmem:[#allocation16 + $0x48] sm:$0xff]  }
 0x18a   :  { %1659 = vmatpush1.bf16.msra.mxu1 %v2494_v61  ;;  %1700 = vmatpush1.bf16.msra.mxu0 %v2497_v62  ;;  %v2567_v61 = vld [vmem:[#allocation16 + $0x8] sm:$0xff]   ;;  %v2568_v62 = vld [vmem:[#allocation16 + $0x40] sm:$0xff]  }
 0x18b   :  { %1660 = vmatprep.subr.bf16.mxu1 %v2502_v63  ;;  %1701 = vmatprep.subr.bf16.mxu0 %v2505_v0  ;;  %v2569_v63 = vld [vmem:[#allocation16] sm:$0xff]  }
 0x18e   :  { %1661 = vmatpush1.bf16.msra.mxu1 %v2500_v1  ;;  %1702 = vmatpush1.bf16.msra.mxu0 %v2503_v2 }
 0x18f   :  { %1662 = vmatprep.subr.bf16.mxu1 %v2508_v3  ;;  %1703 = vmatprep.subr.bf16.mxu0 %v2511_v4 }
 0x192   :  { %1663 = vmatpush2.bf16.msra.mxu1 %v2506_v5  ;;  %1704 = vmatpush2.bf16.msra.mxu0 %v2509_v6 }
 0x193   :  { %1664 = vmatprep.subr.bf16.mxu1 %v2514_v7  ;;  %1705 = vmatprep.subr.bf16.mxu0 %v2517_v8  ;;  %v1080_v8 = vld [vmem:[%s2956_s7] sm:$0x3f] }
 0x196   :  { %1665 = vmatpush2.bf16.msra.mxu1 %v2512_v9  ;;  %1706 = vmatpush2.bf16.msra.mxu0 %v2515_v10  ;;  %v343_v9 = vld [vmem:[%s2954_s5] sm:$0x3f]  ;;  %v1085_v10 = vrot.slane %v1080_v8, %v2888_v14  ;;  %s2796_s5 = smov [#allocation18]  }
 0x197   :  { %1666 = vmatprep.subr.bf16.mxu1 %v2520_v11  ;;  %1707 = vmatprep.subr.bf16.mxu0 %v2523_v12  ;;  %v348_v11 = vrot.slane %v343_v9, %v2888_v14  ;;  %v1089_v12 = vrot.slane %v1080_v8, %v2891_v16  ;;  %v355_v14 = vsub.s32 2, %v2885_v13  ;;  %s1978_s7 = sshll.u32 %s2796_s5, 4  ;;  %s1979_s7 = int_to_ptr.vmem [resolvable:$true] %s1978_s7 }
 0x198   :  { %s2730_s15 = scalar_lea.vmem %s1979_s7, 256  ;;  %p2735_p8 = scmp.lt.s32.totalorder %s1979_s7, %s1979_s7 }
 0x199   :  { %p2731_p7 = scmp.ne.s32.totalorder %s1979_s7, %s2730_s15  ;;  %p2736_p9 = scmp.lt.s32.totalorder %s2730_s15, %s2730_s15 }
 0x19a   :  { %1667 = vmatpush2.bf16.msra.mxu1 %v2518_v15  ;;  %1708 = vmatpush2.bf16.msra.mxu0 %v2521_v17  ;;  %v352_v15 = vrot.slane %v343_v9, %v2891_v16  ;;  %v359_v16 = vsub.s32 3, %v2885_v13 }
 0x19b   :  { %1668 = vmatprep.subr.bf16.mxu1 %v2526_v18  ;;  %1709 = vmatprep.subr.bf16.mxu0 %v2529_v19  ;;  %p2737_p10 = por %p2736_p9, %p2735_p8 }
 0x19d   :  { %p2738_p11 = pnand %p2737_p10, %p2731_p7 }
 0x19e   :  { %1669 = vmatpush2.bf16.msra.mxu1 %v2524_v20  ;;  %1710 = vmatpush2.bf16.msra.mxu0 %v2527_v21 }
 0x19f   :  { %1670 = vmatprep.subr.bf16.mxu1 %v2532_v22  ;;  %1711 = vmatprep.subr.bf16.mxu0 %v2535_v23 }
 0x1a2   :  { %1671 = vmatpush2.bf16.msra.mxu1 %v2530_v24  ;;  %1712 = vmatpush2.bf16.msra.mxu0 %v2533_v25 }
 0x1a3   :  { %1672 = vmatprep.subr.bf16.mxu1 %v2538_v26  ;;  %1713 = vmatprep.subr.bf16.mxu0 %v2541_v28 }
 0x1a6   :  { %1673 = vmatpush2.bf16.msra.mxu1 %v2536_v29  ;;  %1714 = vmatpush2.bf16.msra.mxu0 %v2539_v30  ;;  %v363_v30 = vsub.s32 4, %v2885_v13 }
 0x1a7   :  { %1674 = vmatprep.subr.bf16.mxu1 %v2544_v32  ;;  %1715 = vmatprep.subr.bf16.mxu0 %v2547_v33  ;;  %v367_v32 = vsub.s32 5, %v2885_v13  ;;  %v356_v33 = vrot.slane %v343_v9, %v355_v14 }
 0x1aa   :  { %1675 = vmatpush2.bf16.msra.mxu1 %v2542_v36  ;;  %1716 = vmatpush2.bf16.msra.mxu0 %v2545_v37  ;;  %v1093_v36 = vrot.slane %v1080_v8, %v355_v14  ;;  %v1101_v37 = vrot.slane %v1080_v8, %v363_v30 }
 0x1ab   :  { %1676 = vmatprep.subr.bf16.mxu1 %v2550_v39  ;;  %1717 = vmatprep.subr.bf16.mxu0 %v2553_v40  ;;  %v360_v39 = vrot.slane %v343_v9, %v359_v16  ;;  %v364_v40 = vrot.slane %v343_v9, %v363_v30 }
 0x1ae   :  { %1677 = vmatpush2.bf16.msra.mxu1 %v2548_v41  ;;  %1718 = vmatpush2.bf16.msra.mxu0 %v2551_v42  ;;  %v1097_v41 = vrot.slane %v1080_v8, %v359_v16  ;;  %v1105_v42 = vrot.slane %v1080_v8, %v367_v32 }
 0x1af   :  { %2216 = vmatprep.subr.bf16.mxu1 %v2554_v50 }
 0x1b1   :  { %1679 = vmatmul.mubr.bf16.vlgmr.msra.gmra.mxu1 %v2910_v38  ;;  %1720 = vmatmul.mubr.bf16.vlgmr.msra.gmra.mxu0 %v2910_v38  ;;  %v2559_v38 = vld [vmem:[#allocation16 + $0x28] sm:$0xff]  }
 0x1b2   :  { %2217 = vmatpush3.bf16.msra.mxu1 %v2555_v51 }
 0x1b3   :  { %2218 = vmatprep.subr.bf16.mxu1 %v2556_v52 }
 0x1b6   :  { %2219 = vmatpush3.bf16.msra.mxu1 %v2557_v53 }
 0x1b7   :  { %2220 = vmatprep.subr.bf16.mxu1 %v2558_v54 }
 0x1ba   :  { %2221 = vmatpush3.bf16.msra.mxu1 %v2559_v38 }
 0x1bb   :  { %2222 = vmatprep.subr.bf16.mxu1 %v2560_v34 }
 0x1be   :  { %2223 = vmatpush3.bf16.msra.mxu1 %v2561_v55 }
 0x1bf   :  { %2224 = vmatprep.subr.bf16.mxu1 %v2562_v56 }
 0x1c2   :  { %2225 = vmatpush3.bf16.msra.mxu1 %v2563_v57 }
 0x1c3   :  { %2226 = vmatprep.subr.bf16.mxu1 %v2564_v58 }
 0x1c6   :  { %2227 = vmatpush3.bf16.msra.mxu1 %v2565_v59 }
 0x1c7   :  { %2228 = vmatprep.subr.bf16.mxu1 %v2566_v60 }
 0x1ca   :  { %2229 = vmatpush3.bf16.msra.mxu1 %v2567_v61 }
 0x1cb   :  { %2230 = vmatprep.subr.bf16.mxu1 %v2568_v62 }
 0x1ce   :  { %2231 = vmatpush3.bf16.msra.mxu1 %v2569_v63 }
 0x1f1   :  { %v889_v43 = vpop.f32.mrf.mxu1  ;;  %v2918_v44 = vpop.f32.mrf.mxu0 }
 0x1f2   :  { %v890_v18 = vadd.f32 %v889_v43, %v348_v11  ;;  %v368_v43 = vrot.slane %v343_v9, %v367_v32 }
 0x1f3   :  { %v891_v45 = vpop.f32.mrf.mxu1  ;;  %v2920_v46 = vpop.f32.mrf.mxu0 }
 0x1f4   :  { %v892_v20 = vadd.f32 %v891_v45, %v352_v15  ;;  %v933_v51 = vadd.f32 %v2920_v46, %v360_v39 }
 0x1f5   :  { %v893_v47 = vpop.f32.mrf.mxu1  ;;  %v934_v48 = vpop.f32.mrf.mxu0 }
 0x1f6   :  { %v931_v48 = vadd.f32 %v2918_v44, %v356_v33 }
 0x1f7   :  { %v894_v31 = vpop.f32.mrf.mxu1  ;;  %v935_v49 = vpop.f32.mrf.mxu0 }
 0x231   :  { %v971_v0 = vpop.f32.mrf.mxu1  ;;  %v1639_v1 = vpop.f32.mrf.mxu0 }
 0x232   :  { %v1640_v17 = vadd.f32 %v1639_v1, %v1085_v10  ;;  %v972_v52 = vadd.f32 %v971_v0, %v364_v40 }
 0x233   :  { %v973_v2 = vpop.f32.mrf.mxu1  ;;  %v1641_v3 = vpop.f32.mrf.mxu0 }
 0x234   :  { %v1642_v19 = vadd.f32 %v1641_v3, %v1089_v12  ;;  %v1728_v21 = vadd.f32 %v1640_v17, %v890_v18  ;;  %v974_v57 = vadd.f32 %v973_v2, %v368_v43 }
 0x235   :  { %v975_v4 = vpop.f32.mrf.mxu1  ;;  %v1643_v5 = vpop.f32.mrf.mxu0 }
 0x236   :  { %v1729_v22 = vadd.f32 %v1642_v19, %v892_v20  ;;  %v2195_v23 = vmul.f32 -1.442695, %v1728_v21 }
 0x237   :  { %v976_v6 = vpop.f32.mrf.mxu1  ;;  %v1644_v7 = vpop.f32.mrf.mxu0 }
 0x238   :  { %v2196_v24 = vmul.f32 -1.442695, %v1729_v22  ;;  %2570 = vpow2.f32 %v2195_v23 }
 0x23a   :  { %2572 = vpow2.f32 %v2196_v24 }
 0x245   :  { %v2571_v25 = vpop.eup %2570 }
 0x246   :  { %v1744_v28 = vadd.f32 1.0, %v2571_v25 }
 0x247   :  { %v2573_v26 = vpop.eup %2572 }
 0x248   :  { %v1745_v29 = vadd.f32 1.0, %v2573_v26  ;;  %2574 = vrcp.f32 %v1744_v28 }
 0x24a   :  { %2576 = vrcp.f32 %v1745_v29 }
 0x255   :  { %v2575_v50 = vpop.eup %2574 }
 0x257   :  { %v2577_v56 = vpop.eup %2576 }
 0x271   :  { %v1680_v45 = vpop.f32.mrf.mxu1  ;;  %v1721_v47 = vpop.f32.mrf.mxu0 }
 0x272   :  { %v1681_v31 = vadd.f32 %v1680_v45, %v1093_v36  ;;  %v1722_v49 = vadd.f32 %v1721_v47, %v1101_v37 }
 0x273   :  { %v1682_v53 = vpop.f32.mrf.mxu1  ;;  %v1723_v13 = vpop.f32.mrf.mxu0 }
 0x274   :  { %v1730_v54 = vadd.f32 %v1681_v31, %v931_v48  ;;  %v1756_v38 = vmul.f32 %v2575_v50, %v1722_v49  ;;  %v1683_v34 = vadd.f32 %v1682_v53, %v1097_v41  ;;  %v1724_v55 = vadd.f32 %v1723_v13, %v1105_v42 }
 0x275   :  { %v1684_v58 = vpop.f32.mrf.mxu1  ;;  %v1725_v59 = vpop.f32.mrf.mxu0 }
 0x276   :  { %v2197_v60 = vmul.f32 -1.442695, %v1730_v54  ;;  %v1758_v61 = vadd.f32 %v1756_v38, %v972_v52  ;;  %v1731_v62 = vadd.f32 %v1683_v34, %v933_v51  ;;  %v1757_v44 = vmul.f32 %v2577_v56, %v1724_v55 }
 0x277   :  { %v1685_v63 = vpop.f32.mrf.mxu1  ;;  %v1726_v1 = vpop.f32.mrf.mxu0 }
 0x278   :  { %2578 = vpow2.f32 %v2197_v60  ;;  %v2198_v3 = vmul.f32 -1.442695, %v1731_v62  ;;  %v1759_v46 = vadd.f32 %v1757_v44, %v974_v57 }
 0x27a   :  { %2580 = vpow2.f32 %v2198_v3 }
 0x285   :  { %v2579_v0 = vpop.eup %2578 }
 0x286   :  { %v1746_v4 = vadd.f32 1.0, %v2579_v0 }
 0x287   :  { %v2581_v5 = vpop.eup %2580 }
 0x288   :  { %2582 = vrcp.f32 %v1746_v4  ;;  %v1747_v6 = vadd.f32 1.0, %v2581_v5 }
 0x289   :  { %2584 = vtanh.f32 %v1758_v61 }
 0x28a   :  { %2586 = vrcp.f32 %v1747_v6 }
 0x28b   :  { %2588 = vtanh.f32 %v1759_v46 }
 0x295   :  { %v2583_v2 = vpop.eup %2582 }
 0x296   :  { %v2585_v7 = vpop.eup %2584  ;;  %v1762_v8 = vsub.f32 1.0, %v2583_v2  ;;  %v1766_v12 = vmul.f32 %v2583_v2, %v2906_v35 }
 0x297   :  { %v2587_v9 = vpop.eup %2586 }
 0x298   :  { %v1763_v10 = vsub.f32 1.0, %v2587_v9  ;;  %v1764_v11 = vmul.f32 %v2585_v7, %v1762_v8  ;;  %v2589_v15 = vpop.eup %2588  ;;  %v1767_v18 = vmul.f32 %v2587_v9, %v2895_v27 }
 0x29a   :  { %v1765_v17 = vmul.f32 %v2589_v15, %v1763_v10  ;;  %v1768_v19 = vadd.f32 %v1766_v12, %v1764_v11 }
 0x29c   :  { %v1769_v20 = vadd.f32 %v1767_v18, %v1765_v17  ;;  %1960 = vst [vmem:[#allocation18] sm:$0xff] %v1768_v19  ;;  %v1779_v22 = vpack.c.bf16 %v1768_v19, %v1768_v19 }
 0x29e   :  { %v1780_v21 = vpack.c.bf16 %v1769_v20, %v1769_v20  ;;  %1961 = vst [vmem:[#allocation18 + $0x8] sm:$0xff] %v1769_v20 }
 0x2a0   :  { %1948 = vmatprep.mubr.bf16.mxu1 %v1780_v21 }
 0x2a1   :  { %1949 = vmatmul.mubr.bf16.vlgmr.msra.gmra.mxu1 %v1779_v22 }
 0x2a2   :  { %2741 = shalt.err (!%p2738_p11)
}
 0x2a3   :  { %1981 = dma.vmem_to_hbm [thread:$0]  %s1979_s7, 256, %s2960_s11, [#allocation19]   ;;  %v2199_v35 = vld [vmem:[%s2958_s9] ss:$0 sm:$0xff] }
 0x2a4   :  { %s2797_s20 = smov [#allocation17]  }
 0x2a5   :  { %s1968_s6 = sshll.u32 %s2797_s20, 4  ;;  %s1969_s6 = int_to_ptr.vmem [resolvable:$true] %s1968_s6 }
 0x2a6   :  { %s2750_s21 = scalar_lea.vmem %s1969_s6, 128  ;;  %p2755_p13 = scmp.lt.s32.totalorder %s1969_s6, %s1969_s6 }
 0x2a7   :  { %p2751_p12 = scmp.ne.s32.totalorder %s1969_s6, %s2750_s21  ;;  %p2756_p0 = scmp.lt.s32.totalorder %s2750_s21, %s2750_s21 }
 0x2a9   :  { %p2757_p1 = por %p2756_p0, %p2755_p13 }
 0x2ab   :  { %p2758_p2 = pnand %p2757_p1, %p2751_p12 }
 0x361   :  { %v2232_v27 = vpop.f32.mrf.mxu1 }
 0x363   :  { %v2233_v23 = vpop.f32.mrf.mxu1 }
 0x364   :  { %v2234_v24 = vadd.f32 %v2233_v23, %v2232_v27 }
 0x365   :  { %v2235_v25 = vpop.f32.mrf.mxu1 }
 0x366   :  { %v1951_v26 = vadd.f32 %v2234_v24, %v2199_v35 }
 0x367   :  { %v2236_v28 = vpop.f32.mrf.mxu1 }
 0x368   :  { %1956 = vst [vmem:[#allocation17] sm:$0xff] %v1951_v26 }
 0x369   :  { %2761 = shalt.err (!%p2758_p2)
}
 0x36a   :  { %1971 = dma.vmem_to_hbm [thread:$0]  %s1969_s6, 128, %s2959_s10, [#allocation7]  }
 0x36b   :  { %2778 = dma.done.wait [#allocation7], 128  }
 0x36c   :  { %2779 = vsyncadd [#allocation7], 4294967168 }
 0x36d   :  { %2780 = dma.done.wait [#allocation19], 256  }
 0x36e   :  { %2781 = vsyncadd [#allocation19], 4294967040 }
 0x36f   :  { %1988 = vsyncpa [#allocation6], 1 }
 0x370   :  { %1989 = vsyncpa [#allocation9], 1 }
 0x371   :  { %1990 = vsyncpa [#allocation12], 1 }
 0x372   :  { %1991 = vsyncpa [#allocation15], 1 }
 0x373   :  { %1992 = vsyncpa [#allocation7], 1 }
 0x374   :  { %1993 = vsyncpa [#allocation19], 1 }

</bundles_post_ra>
